<compile_context>
chip_gen: v7x
topology: tpu7x:2x2x1
jax: 0.10.0
libtpu: 0.0.40
codegen_flags: <defaults>
</compile_context>

<pallas_src>
import functools

import jax
import jax.numpy as jnp
from jax.experimental import pallas as pl
from jax.experimental.pallas import tpu as pltpu


def _round_up(x, m):
    return ((x + m - 1) // m) * m


def _forget_gate_kernel(x_ref, h_ref, wf_ref, bf_ref, out_ref, *, compute_dtype):
    # x_ref: (tb, E)  h_ref: (tb, E)  wf_ref: (2E, tn)  bf_ref: (1, tn)
    # out_ref: (tb, tn)
    E = x_ref.shape[-1]
    # In-kernel casts ride the VPU (free in this mem-bound kernel); no
    # wrapper-side convert passes over HBM.
    x = x_ref[...].astype(compute_dtype)
    h = h_ref[...].astype(compute_dtype)
    w_x = wf_ref[pl.ds(0, E), :].astype(compute_dtype)
    w_h = wf_ref[pl.ds(E, E), :].astype(compute_dtype)
    # Two K=E contractions on the MXU replace the concat + single K=2E dot.
    z = jnp.dot(x, w_x, preferred_element_type=jnp.float32)
    z = z + jnp.dot(h, w_h, preferred_element_type=jnp.float32)
    z = z + bf_ref[...].astype(jnp.float32)     # (1, tn) broadcasts over rows
    out_ref[...] = jax.nn.sigmoid(z).astype(out_ref.dtype)


@functools.partial(jax.jit, static_argnames=("compute_dtype", "block_b"))
def forget_gate(X, hidden_state, Wf, bf, *, compute_dtype=jnp.bfloat16,
                block_b=512):
    """sigmoid(cat([X, hidden], -1) @ Wf + bf).

    X, hidden_state: (B, E); Wf: (2E, E); bf: (1, E)  ->  (B, E) in X.dtype.
    compute_dtype: dtype of the matmul operands (cast inside the kernel);
    accumulation is always f32.  bf16 is the recommended path on v5e/v6e/v7x;
    float32 reproduces the PyTorch math exactly.
    """
    B, E = X.shape
    assert hidden_state.shape == (B, E)
    assert Wf.shape == (2 * E, E)
    assert bf.shape == (1, E)
    out_dtype = X.dtype
    cd = jnp.dtype(compute_dtype) if compute_dtype is not None else jnp.dtype(X.dtype)

    # ---- batch tile: multiple of sublane packing of the stored input dtype ----
    sub = 8 * max(1, 4 // jnp.dtype(X.dtype).itemsize)
    tb = max(sub, min(_round_up(B, sub), _round_up(block_b, sub)))
    grid_b = pl.cdiv(B, tb)           # ragged last block is masked by Pallas

    # ---- output-column (N) tile ----
    w_item = jnp.dtype(Wf.dtype).itemsize
    if E % 128 == 0:
        tn = E
        # Small batch (single batch tile): split N so both v7x TCs have work.
        if grid_b < 2 and E >= 256:
            tn = _round_up(pl.cdiv(E, 2), 128)
        # Cap one weight column block at ~8 MiB so double-buffered weight
        # tiles stay well inside v7x's 64 MiB VMEM even at large E.
        max_w_block = 8 * 1024 * 1024
        while tn > 128 and 2 * E * tn * w_item > max_w_block:
            tn = _round_up(pl.cdiv(tn, 2), 128)
    else:
        tn = E                         # non-128-multiple E: keep full lane dim
    grid_n = pl.cdiv(E, tn)

    # ---- VMEM footprint (double-buffered tiles) and per-generation limit ----
    x_item = jnp.dtype(X.dtype).itemsize
    h_item = jnp.dtype(hidden_state.dtype).itemsize
    b_item = jnp.dtype(bf.dtype).itemsize
    o_item = jnp.dtype(out_dtype).itemsize
    vmem_bytes = (2 * tb * E * (x_item + h_item)      # X, hidden tiles
                  + 2 * 2 * E * tn * w_item           # Wf column tile
                  + 2 * 1 * tn * b_item               # bias tile
                  + 2 * tb * tn * o_item)             # output tile
    try:
        phys_vmem = int(pltpu.get_tpu_info().vmem_capacity_bytes)
    except Exception:
        phys_vmem = 64 * 1024 * 1024                  # v7x per-core (smallest)
    ceiling = min(phys_vmem * 3 // 4, 56 * 1024 * 1024)   # ~48 MiB on v7x
    vmem_limit = int(min(max(2 * vmem_bytes, 32 * 1024 * 1024), ceiling))

    kernel = functools.partial(_forget_gate_kernel, compute_dtype=cd)

    # Grid: (N tiles, B tiles).  N is outermost so each weight column tile is
    # DMA'd once and stays resident across every batch tile.
    out = pl.pallas_call(
        kernel,
        out_shape=jax.ShapeDtypeStruct((B, E), out_dtype),
        grid_spec=pltpu.PrefetchScalarGridSpec(
            num_scalar_prefetch=0,
            grid=(grid_n, grid_b),
            in_specs=[
                pl.BlockSpec((tb, E), lambda j, i: (i, 0)),       # X tile
                pl.BlockSpec((tb, E), lambda j, i: (i, 0)),       # hidden tile
                pl.BlockSpec((2 * E, tn), lambda j, i: (0, j)),   # Wf column tile
                pl.BlockSpec((1, tn), lambda j, i: (0, j)),       # bf column tile
            ],
            out_specs=pl.BlockSpec((tb, tn), lambda j, i: (i, j)),
        ),
        compiler_params=pltpu.CompilerParams(
            dimension_semantics=("parallel", "parallel"),
            vmem_limit_bytes=vmem_limit,
        ),
    )(X, hidden_state, Wf, bf)
    return out


def forget_gate_ref(X, hidden_state, Wf, bf, compute_dtype=None):
    """Plain-JAX reference. compute_dtype mimics the kernel's operand cast."""
    dt = jnp.dtype(compute_dtype) if compute_dtype is not None else X.dtype
    xcat = jnp.concatenate([X, hidden_state], axis=-1).astype(dt)
    z = jnp.dot(xcat, Wf.astype(dt), preferred_element_type=jnp.float32)
    z = z + bf.astype(jnp.float32)
    return jax.nn.sigmoid(z).astype(X.dtype)


if __name__ == "__main__":
    B = 200          # not a multiple of 128 -> exercises the ragged last block
    E = 256          # emb_dim (module default)

    key = jax.random.PRNGKey(0)
    kx, kh, kw = jax.random.split(key, 3)

    X = jax.random.normal(kx, (B, E), dtype=jnp.float32)
    hidden_state = jax.random.normal(kh, (B, E), dtype=jnp.float32)
    # Matches nn.Parameter shapes: Wf ~ randn(2E, E), bf = zeros(1, E).
    Wf = jax.random.normal(kw, (2 * E, E), dtype=jnp.float32)
    bf = jnp.zeros((1, E), dtype=jnp.float32)

    # --- exact-semantics path (f32 operands); small batch tile forces two
    #     batch tiles with a ragged last block (tests the no-pad path) ---
    out_f32 = jax.block_until_ready(
        forget_gate(X, hidden_state, Wf, bf, compute_dtype=jnp.float32,
                    block_b=128))
    ref_f32 = forget_gate_ref(X, hidden_state, Wf, bf)
    assert out_f32.shape == (B, E)
    assert jnp.allclose(out_f32, ref_f32, atol=3e-5, rtol=3e-5)

    # --- default fast path (bf16 operands cast in-kernel, f32 accumulation);
    #     single batch tile -> N split across two weight column tiles ---
    out_bf16 = jax.block_until_ready(forget_gate(X, hidden_state, Wf, bf))
    ref_bf16 = forget_gate_ref(X, hidden_state, Wf, bf,
                               compute_dtype=jnp.bfloat16)
    assert out_bf16.shape == (B, E)
    assert jnp.allclose(out_bf16, ref_bf16, atol=2e-3, rtol=2e-3)

    print("KERNEL_OK")
</pallas_src>

<mosaic_0001>
module attributes {stable_mosaic.version = 11 : i64} {
  func.func @_forget_gate_kernel(%arg0: i32, %arg1: i32, %arg2: memref<128x256xf32, #tpu.memory_space<vmem>>, %arg3: memref<128x256xf32, #tpu.memory_space<vmem>>, %arg4: memref<512x256xf32, #tpu.memory_space<vmem>>, %arg5: memref<1x256xf32, #tpu.memory_space<vmem>>, %arg6: memref<128x256xf32, #tpu.memory_space<vmem>>) attributes {dimension_semantics = [#tpu.dimension_semantics<parallel>, #tpu.dimension_semantics<parallel>], iteration_bounds = array<i64: 1, 2>, scalar_prefetch = 0 : i64, scratch_operands = 0 : i64, tpu.core_type = #tpu.core_type<tc>, window_params = [{transform_indices = @transform_0, window_bounds = array<i64: 128, 256>}, {transform_indices = @transform_1, window_bounds = array<i64: 128, 256>}, {transform_indices = @transform_2, window_bounds = array<i64: 512, 256>}, {transform_indices = @transform_3, window_bounds = array<i64: 1, 256>}, {transform_indices = @transform_4, window_bounds = array<i64: 128, 256>}]} {
    %c0 = arith.constant 0 : index
    %c0_0 = arith.constant 0 : index
    %0 = vector.load %arg2[%c0, %c0_0] : memref<128x256xf32, #tpu.memory_space<vmem>>, vector<128x256xf32>
    %c0_1 = arith.constant 0 : index
    %c0_2 = arith.constant 0 : index
    %1 = vector.load %arg3[%c0_1, %c0_2] : memref<128x256xf32, #tpu.memory_space<vmem>>, vector<128x256xf32>
    %c0_3 = arith.constant 0 : index
    %c0_4 = arith.constant 0 : index
    %2 = vector.load %arg4[%c0_3, %c0_4] : memref<512x256xf32, #tpu.memory_space<vmem>>, vector<256x256xf32>
    %c256 = arith.constant 256 : index
    %c0_5 = arith.constant 0 : index
    %3 = vector.load %arg4[%c256, %c0_5] : memref<512x256xf32, #tpu.memory_space<vmem>>, vector<256x256xf32>
    %cst = arith.constant dense<0.000000e+00> : vector<128x256xf32>
    %4 = tpu.matmul %0, %2, %cst {dimension_numbers = #tpu.dot_dimension_numbers<[1], [0], [0], [1], [0, 0, 1, 1], [], []>} : vector<128x256xf32>, vector<256x256xf32>, vector<128x256xf32> -> vector<128x256xf32>
    %cst_6 = arith.constant dense<0.000000e+00> : vector<128x256xf32>
    %5 = tpu.matmul %1, %3, %cst_6 {dimension_numbers = #tpu.dot_dimension_numbers<[1], [0], [0], [1], [0, 0, 1, 1], [], []>} : vector<128x256xf32>, vector<256x256xf32>, vector<128x256xf32> -> vector<128x256xf32>
    %6 = arith.addf %4, %5 : vector<128x256xf32>
    %c0_7 = arith.constant 0 : index
    %c0_8 = arith.constant 0 : index
    %7 = vector.load %arg5[%c0_7, %c0_8] : memref<1x256xf32, #tpu.memory_space<vmem>>, vector<1x256xf32>
    %8 = vector.broadcast %7 : vector<1x256xf32> to vector<128x256xf32>
    %9 = arith.addf %6, %8 : vector<128x256xf32>
    %10 = arith.negf %9 : vector<128x256xf32>
    %11 = math.exp %10 : vector<128x256xf32>
    %cst_9 = arith.constant 1.000000e+00 : f32
    %12 = vector.broadcast %cst_9 : f32 to vector<128x256xf32>
    %13 = arith.addf %12, %11 : vector<128x256xf32>
    %14 = arith.divf %12, %13 : vector<128x256xf32>
    %c0_10 = arith.constant 0 : index
    %c0_11 = arith.constant 0 : index
    %15 = vector.load %arg6[%c0_10, %c0_11] : memref<128x256xf32, #tpu.memory_space<vmem>>, vector<128x256xf32>
    tpu.vector_store %arg6[%c0_10, %c0_11], %14 {strides = array<i32>} : memref<128x256xf32, #tpu.memory_space<vmem>>, vector<128x256xf32>,
    return
  }
  func.func @transform_0(%arg0: i32, %arg1: i32) -> (i32, i32) {
    %c0_i32 = arith.constant 0 : i32
    %c0_i32_0 = arith.constant 0 : i32
    return %arg1, %c0_i32 : i32, i32
  }
  func.func @transform_1(%arg0: i32, %arg1: i32) -> (i32, i32) {
    %c0_i32 = arith.constant 0 : i32
    %c0_i32_0 = arith.constant 0 : i32
    return %arg1, %c0_i32 : i32, i32
  }
  func.func @transform_2(%arg0: i32, %arg1: i32) -> (i32, i32) {
    %c0_i32 = arith.constant 0 : i32
    %c0_i32_0 = arith.constant 0 : i32
    return %c0_i32, %arg0 : i32, i32
  }
  func.func @transform_3(%arg0: i32, %arg1: i32) -> (i32, i32) {
    %c0_i32 = arith.constant 0 : i32
    %c0_i32_0 = arith.constant 0 : i32
    return %c0_i32, %arg0 : i32, i32
  }
  func.func @transform_4(%arg0: i32, %arg1: i32) -> (i32, i32) {
    %c0_i32 = arith.constant 0 : i32
    return %arg1, %arg0 : i32, i32
  }
}

</mosaic_0001>

<bundles_post_ra>
// kernel: forget_gate.1
= control target key start
LH: loop header
LB: loop body
LE: loop exit
PB: predicated region body
PF: predicated region fallthrough
CT: control target
= control target key end

     0   :  { %s2364_s0 = inlined_call_operand.hbm [shape: f32[200,256], index: 0, kind: input, shape index: {}]   ;;  %s2365_s1 = inlined_call_operand.hbm [shape: f32[200,256], index: 1, kind: input, shape index: {}]   ;;  %s2366_s2 = inlined_call_operand.hbm [shape: f32[512,256], index: 2, kind: input, shape index: {}]   ;;  %s2367_s3 = inlined_call_operand.vmem [shape: f32[1,256], index: 3, kind: input, shape index: {}]   ;;  %s2368_s4 = inlined_call_operand.hbm [shape: f32[200,256], index: 4, kind: output, shape index: {}]  }
   0x1   :  { %2372 = sst [smem:[#allocation13_spill]] %s2364_s0 }
   0x2   :  { %2373 = sst [smem:[#allocation14_spill]] %s2366_s2 }
   0x3   :  { %9 = vsyncpa [#allocation3], 0 }
   0x4   :  { %11 = vsyncpa [#allocation3 + $0x1], 0 }
   0x5   :  { %12 = vsyncpa [#allocation6], 0 }
   0x6   :  { %14 = vsyncpa [#allocation6 + $0x1], 0 }
   0x7   :  { %15 = vsyncpa [#allocation4], 0 }
   0x8   :  { %17 = vsyncpa [#allocation4 + $0x1], 0  ;;  %s1940_s15 = smov 0   ;;  %s1942_s16 = smov 0  }
   0x9   :  { %s1944_s17 = smov 0   ;;  %s1946_s18 = smov 0  }
   0xa   :  { %s1948_s19 = smov 0   ;;  %s1950_s20 = smov 0  }
   0xb LB: > { %s1971_s21 = sadd.s32 4294967295, %s1901_s20   ;;  %s1284_s22 = sadd.s32 4294967294, %s1901_s20   ;;  %s1901_s20 = sphi %s1950_s20, %s23_s20   ;;  %s1897_s19 = sphi %s1948_s19, %s2394_s19   ;;  %s1893_s18 = sphi %s1946_s18, %s2393_s18   ;;  %s1889_s17 = sphi %s1944_s17, %s2392_s17   ;;  %s1885_s16 = sphi %s1942_s16, %s2391_s16   ;;  %s1881_s15 = sphi %s1940_s15, %s2390_s15  }
   0xc   : > { %s32_s23 = sadd.s32 1, %s1897_s19  ;;  %s42_s24 = sadd.s32 1, %s1889_s17 }
   0xd   : > { %p33_p0 = scmp.ge.s32.totalorder %s32_s23, 2  ;;  %p49_p1 = scmp.ne.s32.totalorder %s1889_s17, %s1885_s16 }
   0xe   : > { %p50_p2 = scmp.eq.s32.totalorder %s1901_s20, 0  ;;  %p55_p3 = scmp.ne.s32.totalorder %s1885_s16, %s1881_s15 }
   0xf   : > { %s2396_s23 = smov (%p33_p0, %s32_s23), 0  ;;  %p2369_p5 = scmp.eq.s32.totalorder %s1971_s21, 0 }
  0x10   : > { %p1983_p4 = por %p50_p2, %p49_p1  ;;  %s39_s26 = ssub.s32 %s1897_s19, %s2396_s23 }
  0x11   : > { %p159_p6 = scmp.eq.s32.totalorder %s1971_s21, 1  ;;  %p40_p7 = scmp.eq.s32.totalorder %s39_s26, 0 }
  0x12   : > { %s2374_s25 = scalar_select %p1983_p4, 1, 0 }
  0x13   : > { %p1993_p8 = por %p2369_p5, %p55_p3  ;;  %p1997_p9 = por %p159_p6, %p49_p1 }
  0x14   : > { %p165_p10 = scmp.eq.s32.totalorder %s1284_s22, 1  ;;  %p1285_p12 = scmp.ge.s32.totalorder %s1901_s20, 1 }
  0x15   : > { %s2375_s27 = scalar_select %p1993_p8, 1, 0 }
  0x16   : > { %s2376_s28 = scalar_select %p1997_p9, 1, 0 }
  0x17   : > { %s2002_s29 = scalar_select %p40_p7, %s1889_s17, %s42_s24  }
  0x18   : > { %p2004_p11 = por %p165_p10, %p55_p3  ;;  %p172_p13 = scmp.lt.s32.totalorder %s1901_s20, 3 }
  0x19   : > { %s1903_s6 = smov [#allocation7]   ;;  %s2380_s2 = sld [smem:[#allocation14_spill]] }
  0x1a   : > { %s2377_s30 = scalar_select %p2004_p11, 1, 0 }
  0x1b   : > { %p2010_p0 = pnand %p1285_p12, %p172_p13  ;;  %s187_s7 = sshll.u32 %s1903_s6, 4  ;;  %s188_s7 = int_to_ptr.vmem [resolvable:$true] %s187_s7 }
  0x1d   : > { %s2378_s5 = scalar_select %p2010_p0, 1, 0 }
  0x1e   : > { %p1531_p1 = pneg %p2010_p0 }
  0x1f   : > { %s1727_s11 = scalar_lea.hbm %s2380_s2, 16384 }
  0x20   : > { %p2018_p2 = pnand %p1531_p1, %p2369_p5  ;;  %p1728_p3 = scmp.ne.s32.totalorder %s2380_s2, %s1727_s11 }
  0x21   : > { %p1734_p12 = scmp.lt.u32.totalorder %s1727_s11, %s2380_s2 }
  0x22   : > { %p1729_p6 = pneg %p2018_p2 }
  0x24   : > { %p1730_p7 = pnand %p1729_p6, %p1728_p3 }
  0x26   : > { %p1731_p10 = pneg %p1730_p7 }
  0x28   : > { %p1736_p13 = pnand %p1734_p12, %p1731_p10 }
  0x2a   : > { %1739 = shalt.err (!%p1736_p13)
}
  0x2b   : > { %s1740_s24 = scalar_lea.vmem %s188_s7, 16384  ;;  %p1748_p9 = scmp.lt.s32.totalorder %s188_s7, %s188_s7 }
  0x2c   : > { %p1741_p1 = scmp.ne.s32.totalorder %s188_s7, %s1740_s24  ;;  %p1749_p8 = scmp.lt.s32.totalorder %s1740_s24, %s1740_s24 }
  0x2e   : > { %p1743_p5 = pnand %p1741_p1, %p1729_p6  ;;  %p1750_p0 = por %p1749_p8, %p1748_p9 }
  0x30   : > { %p1744_p11 = pneg %p1743_p5 }
  0x32   : > { %p1751_p4 = pnand %p1750_p0, %p1744_p11 }
  0x34   : > { %1754 = shalt.err (!%p1751_p4)
}
  0x35   : > { %s1904_s26 = smov 256   ;;  %s1905_s6 = smov 16  }
  0x36   : > { %1534 = dma.hbm_to_vmem [thread:$0]  (!%p2018_p2), %s2380_s2, 16384, %s188_s7, [#allocation6], %s1904_s26, %s1904_s26, %s1905_s6  }
  0x37   : > { %p1288_p3 = scmp.ge.s32.totalorder %s1901_s20, 2 }
  0x38   : > { %p2381_p5 = scmp.ne.s32.totalorder (!%p1288_p3), %s2374_s25, 0 }
  0x39   : > { %205 = sbr.rel (%p1288_p3) target bundleno = 141 (0x8d), region = 24 }
  0x40   : > { %208 = sbr.rel (!%p2381_p5) target bundleno = 104 (0x68), region = 28  ;;  %s209_s11 = sand.u32 (%p2381_p5), 1, %s1889_s17  }
  0x41   : > { %s1290_s12 = sshll.u32 (%p2381_p5), %s1897_s19, 4  ;;  %s1289_s13 = sshll.u32 (%p2381_p5), %s209_s11, 8 }
  0x42   : > { %s215_s14 = ssub.s32 (%p2381_p5), 25, %s1290_s12  ;;  %s2048_s22 = scalar_lea.sflag (%p2381_p5), [#allocation3], %s209_s11 }
  0x43   : > { %p216_p4 = scmp.lt.s32.totalorder (%p2381_p5), %s215_s14, 16  ;;  %s213_s24 = scalar_lea.vmem (%p2381_p5), [#allocation2], %s1289_s13 }
  0x47   : > { %s2398_s14 = smov (!%p216_p4, %s215_s14), 16 }
  0x48   : > { %s2045_s8 = sshll.u32 %s2398_s14, 8 }
  0x49   : > { %s221_s7 = ssub.s32 4096, %s2045_s8 }
  0x4a   : > { %222 = vsyncadd %s2048_s22, %s221_s7  ;;  %p1293_p8 = scmp.ne.s32.totalorder %s2045_s8, 0  ;;  %s1357_s26 = sshll.u32 %s1897_s19, 12 }
  0x4b   : > { %s2382_s0 = sld [smem:[#allocation13_spill]]  ;;  %s228_s11 = sshll.u32 %s213_s24, 4  ;;  %s2058_s11 = int_to_ptr.vmem [resolvable:$true] %s228_s11 }
  0x51   : > { %s2056_s10 = scalar_lea.hbm %s2382_s0, %s1357_s26  ;;  %s1759_s7 = scalar_lea.hbm %s2382_s0, 6400 }
  0x52   : > { %s1755_s12 = scalar_lea.hbm %s2056_s10, %s2045_s8  ;;  %p1760_p2 = scmp.lt.u32.totalorder %s2056_s10, %s2382_s0 }
  0x53   : > { %p1756_p9 = scmp.ne.s32.totalorder %s2056_s10, %s1755_s12  ;;  %p1761_p6 = scmp.lt.u32.totalorder %s1759_s7, %s1755_s12 }
  0x54   : > { %p1763_p10 = scmp.lt.u32.totalorder %s1755_s12, %s2056_s10 }
  0x55   : > { %p1757_p11 = pnand %p1756_p9, %p1293_p8  ;;  %p1762_p7 = por %p1761_p6, %p1760_p2 }
  0x57   : > { %p1758_p0 = pneg %p1757_p11  ;;  %p1764_p12 = por %p1763_p10, %p1762_p7 }
  0x59   : > { %p1765_p13 = pnand %p1764_p12, %p1758_p0 }
  0x5b   : > { %1768 = shalt.err (!%p1765_p13)
}
  0x5c   : > { %s1769_s24 = scalar_lea.vmem %s2058_s11, %s2045_s8  ;;  %s1906_s26 = smov [#allocation2]  }
  0x5d   : > { %p1770_p1 = scmp.ne.s32.totalorder %s2058_s11, %s1769_s24  ;;  %s1773_s9 = sshll.u32 %s1906_s26, 4  ;;  %s1774_s9 = int_to_ptr.vmem [resolvable:$false] %s1773_s9 }
  0x5e   : > { %s1775_s2 = scalar_lea.vmem %s1774_s9, 8192  ;;  %p1776_p9 = scmp.lt.s32.totalorder %s2058_s11, %s1774_s9 }
  0x5f   : > { %p1771_p5 = pnand %p1770_p1, %p1293_p8  ;;  %p1777_p11 = scmp.lt.s32.totalorder %s1775_s2, %s1769_s24 }
  0x61   : > { %p1772_p4 = pneg %p1771_p5  ;;  %p1778_p2 = por %p1777_p11, %p1776_p9 }
  0x63   : > { %p1779_p6 = pnand %p1778_p2, %p1772_p4 }
  0x65   : > { %1782 = shalt.err (!%p1779_p6)
}
  0x66   : > { %s1907_s12 = smov 256   ;;  %s1908_s13 = smov 16  }
  0x67   : > { %234 = dma.hbm_to_vmem [thread:$0]  (%p1293_p8), %s2056_s10, %s2045_s8, %s2058_s11, %s2048_s22, %s1907_s12, %s1907_s12, %s1908_s13  }
  0x68 PF: > { %p2383_p0 = scmp.ne.s32.totalorder %s2374_s25, 0 }
  0x69   : > { %s238_s14 = sand.u32 (%p2383_p0), 1, %s1901_s20   ;;  %s240_s7 = sand.u32 (%p2383_p0), 1, %s1889_s17  }
  0x6a   : > { %237 = sbr.rel (!%p2383_p0) target bundleno = 141 (0x8d), region = 32  ;;  %s1298_s6 = sshll.u32 (%p2383_p0), %s240_s7, 8 }
  0x6b   : > { %s1299_s24 = sshll.u32 (%p2383_p0), %s1897_s19, 4  ;;  %s2093_s0 = scalar_lea.sflag (%p2383_p0), [#allocation6], %s238_s14 }
  0x6c   : > { %s244_s26 = ssub.s32 (%p2383_p0), 25, %s1299_s24  ;;  %s242_s8 = scalar_lea.vmem (%p2383_p0), [#allocation5], %s1298_s6 }
  0x6d   : > { %p245_p7 = scmp.lt.s32.totalorder (%p2383_p0), %s244_s26, 16 }
  0x71   : > { %s2400_s26 = smov (!%p245_p7, %s244_s26), 16 }
  0x72   : > { %s2090_s9 = sshll.u32 %s2400_s26, 8 }
  0x73   : > { %s250_s2 = ssub.s32 4096, %s2090_s9 }
  0x74   : > { %251 = vsyncadd %s2093_s0, %s250_s2  ;;  %p1302_p8 = scmp.ne.s32.totalorder %s2090_s9, 0  ;;  %s1360_s25 = sshll.u32 %s1897_s19, 12 }
  0x75   : > { %s2101_s11 = scalar_lea.hbm %s2365_s1, %s1360_s25  ;;  %s257_s12 = sshll.u32 %s242_s8, 4  ;;  %s2103_s12 = int_to_ptr.vmem [resolvable:$true] %s257_s12 }
  0x76   : > { %s1783_s13 = scalar_lea.hbm %s2101_s11, %s2090_s9  ;;  %s1787_s6 = scalar_lea.hbm %s2365_s1, 6400 }
  0x77   : > { %p1784_p10 = scmp.ne.s32.totalorder %s2101_s11, %s1783_s13  ;;  %p1788_p1 = scmp.lt.u32.totalorder %s2101_s11, %s2365_s1 }
  0x78   : > { %p1789_p5 = scmp.lt.u32.totalorder %s1787_s6, %s1783_s13  ;;  %p1791_p9 = scmp.lt.u32.totalorder %s1783_s13, %s2101_s11 }
  0x79   : > { %p1785_p12 = pnand %p1784_p10, %p1302_p8 }
  0x7a   : > { %p1790_p4 = por %p1789_p5, %p1788_p1 }
  0x7b   : > { %p1786_p13 = pneg %p1785_p12 }
  0x7c   : > { %p1792_p11 = por %p1791_p9, %p1790_p4 }
  0x7e   : > { %p1793_p2 = pnand %p1792_p11, %p1786_p13 }
  0x80   : > { %1796 = shalt.err (!%p1793_p2)
}
  0x81   : > { %s1797_s2 = scalar_lea.vmem %s2103_s12, %s2090_s9  ;;  %s1909_s8 = smov [#allocation5]  }
  0x82   : > { %p1798_p6 = scmp.ne.s32.totalorder %s2103_s12, %s1797_s2  ;;  %s1801_s25 = sshll.u32 %s1909_s8, 4  ;;  %s1802_s25 = int_to_ptr.vmem [resolvable:$false] %s1801_s25 }
  0x83   : > { %s1803_s22 = scalar_lea.vmem %s1802_s25, 8192  ;;  %p1804_p10 = scmp.lt.s32.totalorder %s2103_s12, %s1802_s25 }
  0x84   : > { %p1799_p0 = pnand %p1798_p6, %p1302_p8  ;;  %p1805_p12 = scmp.lt.s32.totalorder %s1803_s22, %s1797_s2 }
  0x86   : > { %p1800_p7 = pneg %p1799_p0  ;;  %p1806_p1 = por %p1805_p12, %p1804_p10 }
  0x88   : > { %p1807_p5 = pnand %p1806_p1, %p1800_p7 }
  0x8a   : > { %1810 = shalt.err (!%p1807_p5)
}
  0x8b   : > { %s1910_s10 = smov 256   ;;  %s1911_s13 = smov 16  }
  0x8c   : > { %263 = dma.hbm_to_vmem [thread:$0]  (%p1302_p8), %s2101_s11, %s2090_s9, %s2103_s12, %s2093_s0, %s1910_s10, %s1910_s10, %s1911_s13  }
  0x8d PF: > { %p2384_p13 = scmp.ne.s32.totalorder %s2378_s5, 0 }
  0x8e   : > { %s2133_s14 = sand.u32 (!%p2384_p13), 1, %s1885_s16   ;;  %p2385_p4 = scmp.ne.s32.totalorder (!%p2384_p13), %s2375_s27, 0 }
  0x8f   : > { %269 = sbr.rel (%p2384_p13) target bundleno = 562 (0x232), region = 36  ;;  %s2136_s7 = sshll.u32 (!%p2384_p13), %s2133_s14, 8 }
  0x90   : > { %s272_s6 = scalar_lea.sflag (!%p2384_p13), [#allocation3], %s2133_s14  ;;  %s2140_s24 = scalar_lea.vmem (!%p2384_p13), [#allocation2], %s2136_s7 }
  0x96   : > { %1864 = dma.done.wait (%p2385_p4), %s272_s6, 4096  }
  0x97   : > { %1866 = vsyncadd (%p2385_p4), %s272_s6, 4294963200  ;;  %s280_s0 = sand.u32 1, %s1971_s21   ;;  %s2148_s9 = scalar_lea.vmem [#allocation5], %s2136_s7 }
  0x98   : > { %s281_s5 = scalar_lea.sflag [#allocation6], %s280_s0 }
  0x99   : > { %1868 = dma.done.wait (%p2385_p4), %s281_s5, 4096  }
  0x9a   : > { %1870 = vsyncadd (%p2385_p4), %s281_s5, 4294963200  ;;  %p2386_p8 = scmp.eq.s32.totalorder %s1971_s21, 0 }
  0x9c   : > { %1872 = dma.done.wait (%p2386_p8), [#allocation6], 16384   ;;  %p2387_p9 = pmov %p2386_p8 }
  0x9d   : > { %v476_v0 = vld [vmem:[#allocation7 + $0x208] sm:$0xff]  ;;  %v478_v1 = vld [vmem:[#allocation7 + $0x218] sm:$0xff]  ;;  %v475_v5 = vld [vmem:[#allocation7 + $0x200] sm:$0xff]  ;;  %s2244_s11 = scalar_lea.vmem [#allocation8], %s2136_s7  ;;  %s1130_s12 = scalar_lea.sflag [#allocation4], %s2133_s14 }
  0x9e   : > { %1874 = vsyncadd (%p2387_p9), [#allocation6], 4294950912  ;;  %v412_v2 = vld [vmem:[#allocation7 + $0x8] sm:$0xff]  ;;  %v1364_v3 = vpack.c.bf16 %v478_v1, %v476_v0  ;;  %v414_v4 = vld [vmem:[#allocation7 + $0x18] sm:$0xff]  ;;  %p2388_p11 = scmp.ne.s32.totalorder %s2376_s28, 0 }
  0x9f   : > { %v477_v6 = vld [vmem:[#allocation7 + $0x210] sm:$0xff]  ;;  %v1428_v7 = vpack.c.bf16 %v414_v4, %v412_v2  ;;  %v411_v9 = vld [vmem:[#allocation7] sm:$0xff]  ;;  %v480_v11 = vld [vmem:[#allocation7 + $0x228] sm:$0xff]  ;;  %s1345_s26 = sshll.u32 (%p2388_p11), %s1893_s18, 4 }
  0xa0   : > { %v1366_v8 = vpack.c.bf16 %v477_v6, %v475_v5  ;;  %v413_v10 = vld [vmem:[#allocation7 + $0x10] sm:$0xff]  ;;  %1365 = vmatprep.subr.bf16.mxu1 %v1364_v3  ;;  %v482_v13 = vld [vmem:[#allocation7 + $0x238] sm:$0xff]  ;;  %v416_v14 = vld [vmem:[#allocation7 + $0x28] sm:$0xff]  ;;  %s1139_s2 = ssub.s32 (%p2388_p11), 25, %s1345_s26 }
  0xa1   : > { %v1430_v12 = vpack.c.bf16 %v413_v10, %v411_v9  ;;  %v418_v15 = vld [vmem:[#allocation7 + $0x38] sm:$0xff]  ;;  %1429 = vmatprep.subr.bf16.mxu0 %v1428_v7  ;;  %v1368_v16 = vpack.c.bf16 %v482_v13, %v480_v11  ;;  %v479_v18 = vld [vmem:[#allocation7 + $0x220] sm:$0xff]  ;;  %v481_v19 = vld [vmem:[#allocation7 + $0x230] sm:$0xff]  ;;  %p1140_p2 = scmp.lt.s32.totalorder (%p2388_p11), %s1139_s2, 16 }
  0xa2   : > { %1367 = vmatpush1.bf16.msra.mxu1 %v1366_v8  ;;  %v1432_v17 = vpack.c.bf16 %v418_v15, %v416_v14  ;;  %v415_v20 = vld [vmem:[#allocation7 + $0x20] sm:$0xff]  ;;  %v1370_v21 = vpack.c.bf16 %v481_v19, %v479_v18  ;;  %v417_v22 = vld [vmem:[#allocation7 + $0x30] sm:$0xff]  ;;  %v484_v23 = vld [vmem:[#allocation7 + $0x248] sm:$0xff] }
  0xa3   : > { %1431 = vmatpush1.bf16.msra.mxu0 %v1430_v12  ;;  %v486_v24 = vld [vmem:[#allocation7 + $0x258] sm:$0xff]  ;;  %1369 = vmatprep.subr.bf16.mxu1 %v1368_v16  ;;  %v1434_v25 = vpack.c.bf16 %v417_v22, %v415_v20  ;;  %v420_v27 = vld [vmem:[#allocation7 + $0x48] sm:$0xff]  ;;  %v483_v29 = vld [vmem:[#allocation7 + $0x240] sm:$0xff] }
  0xa4   : > { %1433 = vmatprep.subr.bf16.mxu0 %v1432_v17  ;;  %v1372_v26 = vpack.c.bf16 %v486_v24, %v484_v23  ;;  %v422_v28 = vld [vmem:[#allocation7 + $0x58] sm:$0xff]  ;;  %v485_v31 = vld [vmem:[#allocation7 + $0x250] sm:$0xff]  ;;  %v419_v32 = vld [vmem:[#allocation7 + $0x40] sm:$0xff] }
  0xa5   : > { %v1436_v30 = vpack.c.bf16 %v422_v28, %v420_v27  ;;  %v421_v33 = vld [vmem:[#allocation7 + $0x50] sm:$0xff]  ;;  %v1374_v34 = vpack.c.bf16 %v485_v31, %v483_v29  ;;  %v488_v35 = vld [vmem:[#allocation7 + $0x268] sm:$0xff]  ;;  %v490_v36 = vld [vmem:[#allocation7 + $0x278] sm:$0xff] }
  0xa6   : > { %1371 = vmatpush1.bf16.msra.mxu1 %v1370_v21  ;;  %v424_v37 = vld [vmem:[#allocation7 + $0x68] sm:$0xff]  ;;  %v1438_v38 = vpack.c.bf16 %v421_v33, %v419_v32  ;;  %v1376_v39 = vpack.c.bf16 %v490_v36, %v488_v35  ;;  %v426_v40 = vld [vmem:[#allocation7 + $0x78] sm:$0xff]  ;;  %v487_v41 = vld [vmem:[#allocation7 + $0x260] sm:$0xff] }
  0xa7   : > { %1435 = vmatpush1.bf16.msra.mxu0 %v1434_v25  ;;  %1373 = vmatprep.subr.bf16.mxu1 %v1372_v26  ;;  %v489_v42 = vld [vmem:[#allocation7 + $0x270] sm:$0xff]  ;;  %v1440_v43 = vpack.c.bf16 %v426_v40, %v424_v37  ;;  %v423_v44 = vld [vmem:[#allocation7 + $0x60] sm:$0xff]  ;;  %v492_v46 = vld [vmem:[#allocation7 + $0x288] sm:$0xff] }
  0xa8   : > { %1437 = vmatprep.subr.bf16.mxu0 %v1436_v30  ;;  %v425_v45 = vld [vmem:[#allocation7 + $0x70] sm:$0xff]  ;;  %v494_v47 = vld [vmem:[#allocation7 + $0x298] sm:$0xff]  ;;  %v428_v48 = vld [vmem:[#allocation7 + $0x88] sm:$0xff]  ;;  %v1378_v50 = vpack.c.bf16 %v489_v42, %v487_v41 }
  0xa9   : > { %v430_v49 = vld [vmem:[#allocation7 + $0x98] sm:$0xff]  ;;  %v1442_v51 = vpack.c.bf16 %v425_v45, %v423_v44  ;;  %v1380_v52 = vpack.c.bf16 %v494_v47, %v492_v46  ;;  %v491_v53 = vld [vmem:[#allocation7 + $0x280] sm:$0xff]  ;;  %v493_v54 = vld [vmem:[#allocation7 + $0x290] sm:$0xff] }
  0xaa   : > { %1375 = vmatpush1.bf16.msra.mxu1 %v1374_v34  ;;  %v427_v55 = vld [vmem:[#allocation7 + $0x80] sm:$0xff]  ;;  %v1444_v56 = vpack.c.bf16 %v430_v49, %v428_v48  ;;  %v429_v57 = vld [vmem:[#allocation7 + $0x90] sm:$0xff]  ;;  %v496_v58 = vld [vmem:[#allocation7 + $0x2a8] sm:$0xff]  ;;  %v1382_v62 = vpack.c.bf16 %v493_v54, %v491_v53 }
  0xab   : > { %1439 = vmatpush1.bf16.msra.mxu0 %v1438_v38  ;;  %1377 = vmatprep.subr.bf16.mxu1 %v1376_v39  ;;  %v498_v59 = vld [vmem:[#allocation7 + $0x2b8] sm:$0xff]  ;;  %v432_v60 = vld [vmem:[#allocation7 + $0xa8] sm:$0xff]  ;;  %v1446_v63 = vpack.c.bf16 %v429_v57, %v427_v55  ;;  %v495_v1 = vld [vmem:[#allocation7 + $0x2a0] sm:$0xff] }
  0xac   : > { %1441 = vmatprep.subr.bf16.mxu0 %v1440_v43  ;;  %v434_v61 = vld [vmem:[#allocation7 + $0xb8] sm:$0xff]  ;;  %v1384_v0 = vpack.c.bf16 %v498_v59, %v496_v58  ;;  %v497_v2 = vld [vmem:[#allocation7 + $0x2b0] sm:$0xff]  ;;  %v431_v3 = vld [vmem:[#allocation7 + $0xa0] sm:$0xff] }
  0xad   : > { %v1448_v4 = vpack.c.bf16 %v434_v61, %v432_v60  ;;  %v433_v5 = vld [vmem:[#allocation7 + $0xb0] sm:$0xff]  ;;  %v500_v6 = vld [vmem:[#allocation7 + $0x2c8] sm:$0xff]  ;;  %v502_v7 = vld [vmem:[#allocation7 + $0x2d8] sm:$0xff]  ;;  %v1386_v10 = vpack.c.bf16 %v497_v2, %v495_v1 }
  0xae   : > { %1379 = vmatpush1.bf16.msra.mxu1 %v1378_v50  ;;  %v436_v8 = vld [vmem:[#allocation7 + $0xc8] sm:$0xff]  ;;  %v438_v9 = vld [vmem:[#allocation7 + $0xd8] sm:$0xff]  ;;  %v1450_v11 = vpack.c.bf16 %v433_v5, %v431_v3  ;;  %v1388_v12 = vpack.c.bf16 %v502_v7, %v500_v6  ;;  %v499_v13 = vld [vmem:[#allocation7 + $0x2c0] sm:$0xff] }
  0xaf   : > { %1443 = vmatpush1.bf16.msra.mxu0 %v1442_v51  ;;  %1381 = vmatprep.subr.bf16.mxu1 %v1380_v52  ;;  %v501_v14 = vld [vmem:[#allocation7 + $0x2d0] sm:$0xff]  ;;  %v435_v15 = vld [vmem:[#allocation7 + $0xc0] sm:$0xff]  ;;  %v1452_v16 = vpack.c.bf16 %v438_v9, %v436_v8  ;;  %v504_v18 = vld [vmem:[#allocation7 + $0x2e8] sm:$0xff] }
  0xb0   : > { %1445 = vmatprep.subr.bf16.mxu0 %v1444_v56  ;;  %v437_v17 = vld [vmem:[#allocation7 + $0xd0] sm:$0xff]  ;;  %v506_v19 = vld [vmem:[#allocation7 + $0x2f8] sm:$0xff]  ;;  %v440_v20 = vld [vmem:[#allocation7 + $0xe8] sm:$0xff]  ;;  %v1390_v22 = vpack.c.bf16 %v501_v14, %v499_v13 }
  0xb1   : > { %v442_v21 = vld [vmem:[#allocation7 + $0xf8] sm:$0xff]  ;;  %v1454_v23 = vpack.c.bf16 %v437_v17, %v435_v15  ;;  %v1392_v24 = vpack.c.bf16 %v506_v19, %v504_v18  ;;  %v503_v25 = vld [vmem:[#allocation7 + $0x2e0] sm:$0xff]  ;;  %v505_v26 = vld [vmem:[#allocation7 + $0x2f0] sm:$0xff] }
  0xb2   : > { %1383 = vmatpush1.bf16.msra.mxu1 %v1382_v62  ;;  %v439_v27 = vld [vmem:[#allocation7 + $0xe0] sm:$0xff]  ;;  %v1456_v28 = vpack.c.bf16 %v442_v21, %v440_v20  ;;  %v441_v29 = vld [vmem:[#allocation7 + $0xf0] sm:$0xff]  ;;  %v508_v30 = vld [vmem:[#allocation7 + $0x308] sm:$0xff]  ;;  %v1394_v34 = vpack.c.bf16 %v505_v26, %v503_v25 }
  0xb3   : > { %1447 = vmatpush1.bf16.msra.mxu0 %v1446_v63  ;;  %1385 = vmatprep.subr.bf16.mxu1 %v1384_v0  ;;  %v510_v31 = vld [vmem:[#allocation7 + $0x318] sm:$0xff]  ;;  %v444_v32 = vld [vmem:[#allocation7 + $0x108] sm:$0xff]  ;;  %v1458_v35 = vpack.c.bf16 %v441_v29, %v439_v27  ;;  %v507_v37 = vld [vmem:[#allocation7 + $0x300] sm:$0xff] }
  0xb4   : > { %1449 = vmatprep.subr.bf16.mxu0 %v1448_v4  ;;  %v446_v33 = vld [vmem:[#allocation7 + $0x118] sm:$0xff]  ;;  %v1396_v36 = vpack.c.bf16 %v510_v31, %v508_v30  ;;  %v509_v38 = vld [vmem:[#allocation7 + $0x310] sm:$0xff]  ;;  %v443_v39 = vld [vmem:[#allocation7 + $0x100] sm:$0xff] }
  0xb5   : > { %v1460_v40 = vpack.c.bf16 %v446_v33, %v444_v32  ;;  %v445_v41 = vld [vmem:[#allocation7 + $0x110] sm:$0xff]  ;;  %v512_v42 = vld [vmem:[#allocation7 + $0x328] sm:$0xff]  ;;  %v514_v43 = vld [vmem:[#allocation7 + $0x338] sm:$0xff]  ;;  %v1398_v46 = vpack.c.bf16 %v509_v38, %v507_v37 }
  0xb6   : > { %1387 = vmatpush1.bf16.msra.mxu1 %v1386_v10  ;;  %v448_v44 = vld [vmem:[#allocation7 + $0x128] sm:$0xff]  ;;  %v450_v45 = vld [vmem:[#allocation7 + $0x138] sm:$0xff]  ;;  %v1462_v47 = vpack.c.bf16 %v445_v41, %v443_v39  ;;  %v1400_v48 = vpack.c.bf16 %v514_v43, %v512_v42  ;;  %v511_v49 = vld [vmem:[#allocation7 + $0x320] sm:$0xff] }
  0xb7   : > { %1451 = vmatpush1.bf16.msra.mxu0 %v1450_v11  ;;  %1389 = vmatprep.subr.bf16.mxu1 %v1388_v12  ;;  %v513_v50 = vld [vmem:[#allocation7 + $0x330] sm:$0xff]  ;;  %v447_v51 = vld [vmem:[#allocation7 + $0x120] sm:$0xff]  ;;  %v1464_v52 = vpack.c.bf16 %v450_v45, %v448_v44  ;;  %v516_v54 = vld [vmem:[#allocation7 + $0x348] sm:$0xff] }
  0xb8   : > { %1453 = vmatprep.subr.bf16.mxu0 %v1452_v16  ;;  %v449_v53 = vld [vmem:[#allocation7 + $0x130] sm:$0xff]  ;;  %v518_v55 = vld [vmem:[#allocation7 + $0x358] sm:$0xff]  ;;  %v452_v56 = vld [vmem:[#allocation7 + $0x148] sm:$0xff]  ;;  %v1402_v58 = vpack.c.bf16 %v513_v50, %v511_v49 }
  0xb9   : > { %v454_v57 = vld [vmem:[#allocation7 + $0x158] sm:$0xff]  ;;  %v1466_v59 = vpack.c.bf16 %v449_v53, %v447_v51  ;;  %v1404_v60 = vpack.c.bf16 %v518_v55, %v516_v54  ;;  %v515_v61 = vld [vmem:[#allocation7 + $0x340] sm:$0xff]  ;;  %v517_v62 = vld [vmem:[#allocation7 + $0x350] sm:$0xff] }
  0xba   : > { %1391 = vmatpush1.bf16.msra.mxu1 %v1390_v22  ;;  %v451_v63 = vld [vmem:[#allocation7 + $0x140] sm:$0xff]  ;;  %v1468_v0 = vpack.c.bf16 %v454_v57, %v452_v56  ;;  %v453_v1 = vld [vmem:[#allocation7 + $0x150] sm:$0xff]  ;;  %v520_v2 = vld [vmem:[#allocation7 + $0x368] sm:$0xff]  ;;  %v1406_v6 = vpack.c.bf16 %v517_v62, %v515_v61 }
  0xbb   : > { %1455 = vmatpush1.bf16.msra.mxu0 %v1454_v23  ;;  %1393 = vmatprep.subr.bf16.mxu1 %v1392_v24  ;;  %v522_v3 = vld [vmem:[#allocation7 + $0x378] sm:$0xff]  ;;  %v456_v4 = vld [vmem:[#allocation7 + $0x168] sm:$0xff]  ;;  %v519_v7 = vld [vmem:[#allocation7 + $0x360] sm:$0xff]  ;;  %v1470_v8 = vpack.c.bf16 %v453_v1, %v451_v63 }
  0xbc   : > { %1457 = vmatprep.subr.bf16.mxu0 %v1456_v28  ;;  %v458_v5 = vld [vmem:[#allocation7 + $0x178] sm:$0xff]  ;;  %v1408_v9 = vpack.c.bf16 %v522_v3, %v520_v2  ;;  %v521_v10 = vld [vmem:[#allocation7 + $0x370] sm:$0xff]  ;;  %v455_v11 = vld [vmem:[#allocation7 + $0x160] sm:$0xff] }
  0xbd   : > { %v457_v12 = vld [vmem:[#allocation7 + $0x170] sm:$0xff]  ;;  %v1472_v13 = vpack.c.bf16 %v458_v5, %v456_v4  ;;  %v524_v14 = vld [vmem:[#allocation7 + $0x388] sm:$0xff]  ;;  %v526_v15 = vld [vmem:[#allocation7 + $0x398] sm:$0xff]  ;;  %v1410_v20 = vpack.c.bf16 %v521_v10, %v519_v7 }
  0xbe   : > { %1395 = vmatpush1.bf16.msra.mxu1 %v1394_v34  ;;  %v380_v16 = vld [vmem:[%s2148_s9 + $0x8] sm:$0xff]  ;;  %v462_v18 = vld [vmem:[#allocation7 + $0x198] sm:$0xff]  ;;  %v1474_v21 = vpack.c.bf16 %v457_v12, %v455_v11  ;;  %v1412_v22 = vpack.c.bf16 %v526_v15, %v524_v14  ;;  %v523_v23 = vld [vmem:[#allocation7 + $0x380] sm:$0xff] }
  0xbf   : > { %1459 = vmatpush1.bf16.msra.mxu0 %v1458_v35  ;;  %1397 = vmatprep.subr.bf16.mxu1 %v1396_v36  ;;  %v460_v17 = vld [vmem:[#allocation7 + $0x188] sm:$0xff]  ;;  %v525_v24 = vld [vmem:[#allocation7 + $0x390] sm:$0xff]  ;;  %v459_v25 = vld [vmem:[#allocation7 + $0x180] sm:$0xff] }
  0xc0   : > { %1461 = vmatprep.subr.bf16.mxu0 %v1460_v40  ;;  %603 = vmatprep.mubr.f32.mxu1 %v380_v16  ;;  %v348_v19 = vld [vmem:[%s2140_s24 + $0x8] sm:$0xff]  ;;  %v1476_v26 = vpack.c.bf16 %v462_v18, %v460_v17  ;;  %v461_v27 = vld [vmem:[#allocation7 + $0x190] sm:$0xff]  ;;  %v530_v29 = vld [vmem:[#allocation7 + $0x3b8] sm:$0xff]  ;;  %v1414_v32 = vpack.c.bf16 %v525_v24, %v523_v23 }
  0xc1   : > { %764 = vmatprep.mubr.f32.mxu0 %v348_v19  ;;  %v528_v28 = vld [vmem:[#allocation7 + $0x3a8] sm:$0xff]  ;;  %v466_v31 = vld [vmem:[#allocation7 + $0x1b8] sm:$0xff]  ;;  %v1478_v33 = vpack.c.bf16 %v461_v27, %v459_v25  ;;  %v527_v35 = vld [vmem:[#allocation7 + $0x3a0] sm:$0xff] }
  0xc2   : > { %1399 = vmatpush1.bf16.msra.mxu1 %v1398_v46  ;;  %v464_v30 = vld [vmem:[#allocation7 + $0x1a8] sm:$0xff]  ;;  %v1416_v34 = vpack.c.bf16 %v530_v29, %v528_v28  ;;  %v529_v36 = vld [vmem:[#allocation7 + $0x3b0] sm:$0xff]  ;;  %v463_v37 = vld [vmem:[#allocation7 + $0x1a0] sm:$0xff] }
  0xc3   : > { %1463 = vmatpush1.bf16.msra.mxu0 %v1462_v47  ;;  %1401 = vmatprep.subr.bf16.mxu1 %v1400_v48  ;;  %v1480_v38 = vpack.c.bf16 %v466_v31, %v464_v30  ;;  %v465_v39 = vld [vmem:[#allocation7 + $0x1b0] sm:$0xff]  ;;  %v532_v40 = vld [vmem:[#allocation7 + $0x3c8] sm:$0xff]  ;;  %v534_v41 = vld [vmem:[#allocation7 + $0x3d8] sm:$0xff]  ;;  %v1418_v44 = vpack.c.bf16 %v529_v36, %v527_v35 }
  0xc4   : > { %1465 = vmatprep.subr.bf16.mxu0 %v1464_v52  ;;  %v468_v42 = vld [vmem:[#allocation7 + $0x1c8] sm:$0xff]  ;;  %v470_v43 = vld [vmem:[#allocation7 + $0x1d8] sm:$0xff]  ;;  %v1482_v45 = vpack.c.bf16 %v465_v39, %v463_v37  ;;  %v1420_v46 = vpack.c.bf16 %v534_v41, %v532_v40  ;;  %v531_v47 = vld [vmem:[#allocation7 + $0x3c0] sm:$0xff] }
  0xc5   : > { %v533_v48 = vld [vmem:[#allocation7 + $0x3d0] sm:$0xff]  ;;  %v467_v49 = vld [vmem:[#allocation7 + $0x1c0] sm:$0xff]  ;;  %v1484_v50 = vpack.c.bf16 %v470_v43, %v468_v42  ;;  %v536_v52 = vld [vmem:[#allocation7 + $0x3e8] sm:$0xff] }
  0xc6   : > { %1403 = vmatpush1.bf16.msra.mxu1 %v1402_v58  ;;  %v469_v51 = vld [vmem:[#allocation7 + $0x1d0] sm:$0xff]  ;;  %v538_v53 = vld [vmem:[#allocation7 + $0x3f8] sm:$0xff]  ;;  %v472_v54 = vld [vmem:[#allocation7 + $0x1e8] sm:$0xff]  ;;  %v1422_v56 = vpack.c.bf16 %v533_v48, %v531_v47 }
  0xc7   : > { %1467 = vmatpush1.bf16.msra.mxu0 %v1466_v59  ;;  %1405 = vmatprep.subr.bf16.mxu1 %v1404_v60  ;;  %v474_v55 = vld [vmem:[#allocation7 + $0x1f8] sm:$0xff]  ;;  %v1486_v57 = vpack.c.bf16 %v469_v51, %v467_v49  ;;  %v1424_v58 = vpack.c.bf16 %v538_v53, %v536_v52  ;;  %v535_v59 = vld [vmem:[#allocation7 + $0x3e0] sm:$0xff]  ;;  %v537_v60 = vld [vmem:[#allocation7 + $0x3f0] sm:$0xff] }
  0xc8   : > { %1469 = vmatprep.subr.bf16.mxu0 %v1468_v0  ;;  %v1488_v61 = vpack.c.bf16 %v474_v55, %v472_v54  ;;  %v471_v62 = vld [vmem:[#allocation7 + $0x1e0] sm:$0xff]  ;;  %v473_v63 = vld [vmem:[#allocation7 + $0x1f0] sm:$0xff]  ;;  %v1426_v0 = vpack.c.bf16 %v537_v60, %v535_v59  ;;  %v382_v4 = vld [vmem:[%s2148_s9 + $0x18] sm:$0xff] }
  0xc9   : > { %v1490_v1 = vpack.c.bf16 %v473_v63, %v471_v62  ;;  %v379_v2 = vld [vmem:[%s2148_s9] sm:$0xff]  ;;  %v350_v5 = vld [vmem:[%s2140_s24 + $0x18] sm:$0xff]  ;;  %v349_v7 = vld [vmem:[%s2140_s24 + $0x10] sm:$0xff] }
  0xca   : > { %1407 = vmatpush1.bf16.msra.mxu1 %v1406_v6  ;;  %v347_v3 = vld [vmem:[%s2140_s24] sm:$0xff]  ;;  %v381_v6 = vld [vmem:[%s2148_s9 + $0x10] sm:$0xff]  ;;  %v386_v12 = vld [vmem:[%s2148_s9 + $0x38] sm:$0xff] }
  0xcb   : > { %1471 = vmatpush1.bf16.msra.mxu0 %v1470_v8  ;;  %1409 = vmatprep.subr.bf16.mxu1 %v1408_v9  ;;  %v384_v8 = vld [vmem:[%s2148_s9 + $0x28] sm:$0xff]  ;;  %v383_v10 = vld [vmem:[%s2148_s9 + $0x20] sm:$0xff]  ;;  %v385_v14 = vld [vmem:[%s2148_s9 + $0x30] sm:$0xff] }
  0xcc   : > { %1473 = vmatprep.subr.bf16.mxu0 %v1472_v13  ;;  %v352_v9 = vld [vmem:[%s2140_s24 + $0x28] sm:$0xff]  ;;  %v351_v11 = vld [vmem:[%s2140_s24 + $0x20] sm:$0xff]  ;;  %v354_v13 = vld [vmem:[%s2140_s24 + $0x38] sm:$0xff] }
  0xcd   : > { %v353_v15 = vld [vmem:[%s2140_s24 + $0x30] sm:$0xff]  ;;  %v388_v16 = vld [vmem:[%s2148_s9 + $0x48] sm:$0xff]  ;;  %v387_v18 = vld [vmem:[%s2148_s9 + $0x40] sm:$0xff] }
  0xce   : > { %1411 = vmatpush1.bf16.msra.mxu1 %v1410_v20  ;;  %v356_v17 = vld [vmem:[%s2140_s24 + $0x48] sm:$0xff]  ;;  %v355_v19 = vld [vmem:[%s2140_s24 + $0x40] sm:$0xff]  ;;  %v390_v20 = vld [vmem:[%s2148_s9 + $0x58] sm:$0xff] }
  0xcf   : > { %1475 = vmatpush1.bf16.msra.mxu0 %v1474_v21  ;;  %1413 = vmatprep.subr.bf16.mxu1 %v1412_v22  ;;  %v358_v21 = vld [vmem:[%s2140_s24 + $0x58] sm:$0xff]  ;;  %v389_v22 = vld [vmem:[%s2148_s9 + $0x50] sm:$0xff]  ;;  %v392_v24 = vld [vmem:[%s2148_s9 + $0x68] sm:$0xff] }
  0xd0   : > { %1477 = vmatprep.subr.bf16.mxu0 %v1476_v26  ;;  %v357_v23 = vld [vmem:[%s2140_s24 + $0x50] sm:$0xff]  ;;  %v360_v25 = vld [vmem:[%s2140_s24 + $0x68] sm:$0xff]  ;;  %v391_v26 = vld [vmem:[%s2148_s9 + $0x60] sm:$0xff] }
  0xd1   : > { %v359_v27 = vld [vmem:[%s2140_s24 + $0x60] sm:$0xff]  ;;  %v394_v28 = vld [vmem:[%s2148_s9 + $0x78] sm:$0xff]  ;;  %v393_v30 = vld [vmem:[%s2148_s9 + $0x70] sm:$0xff] }
  0xd2   : > { %1415 = vmatpush1.bf16.msra.mxu1 %v1414_v32  ;;  %v362_v29 = vld [vmem:[%s2140_s24 + $0x78] sm:$0xff]  ;;  %v361_v31 = vld [vmem:[%s2140_s24 + $0x70] sm:$0xff]  ;;  %v396_v32 = vld [vmem:[%s2148_s9 + $0x88] sm:$0xff] }
  0xd3   : > { %1479 = vmatpush1.bf16.msra.mxu0 %v1478_v33  ;;  %1417 = vmatprep.subr.bf16.mxu1 %v1416_v34  ;;  %v364_v33 = vld [vmem:[%s2140_s24 + $0x88] sm:$0xff]  ;;  %v395_v34 = vld [vmem:[%s2148_s9 + $0x80] sm:$0xff]  ;;  %v398_v36 = vld [vmem:[%s2148_s9 + $0x98] sm:$0xff] }
  0xd4   : > { %1481 = vmatprep.subr.bf16.mxu0 %v1480_v38  ;;  %v363_v35 = vld [vmem:[%s2140_s24 + $0x80] sm:$0xff]  ;;  %v366_v37 = vld [vmem:[%s2140_s24 + $0x98] sm:$0xff]  ;;  %v397_v38 = vld [vmem:[%s2148_s9 + $0x90] sm:$0xff] }
  0xd5   : > { %v365_v39 = vld [vmem:[%s2140_s24 + $0x90] sm:$0xff]  ;;  %v400_v40 = vld [vmem:[%s2148_s9 + $0xa8] sm:$0xff]  ;;  %v399_v42 = vld [vmem:[%s2148_s9 + $0xa0] sm:$0xff] }
  0xd6   : > { %1419 = vmatpush1.bf16.msra.mxu1 %v1418_v44  ;;  %v368_v41 = vld [vmem:[%s2140_s24 + $0xa8] sm:$0xff]  ;;  %v367_v43 = vld [vmem:[%s2140_s24 + $0xa0] sm:$0xff]  ;;  %v402_v44 = vld [vmem:[%s2148_s9 + $0xb8] sm:$0xff] }
  0xd7   : > { %1483 = vmatpush1.bf16.msra.mxu0 %v1482_v45  ;;  %1421 = vmatprep.subr.bf16.mxu1 %v1420_v46  ;;  %v370_v45 = vld [vmem:[%s2140_s24 + $0xb8] sm:$0xff]  ;;  %v401_v46 = vld [vmem:[%s2148_s9 + $0xb0] sm:$0xff]  ;;  %v404_v48 = vld [vmem:[%s2148_s9 + $0xc8] sm:$0xff] }
  0xd8   : > { %1485 = vmatprep.subr.bf16.mxu0 %v1484_v50  ;;  %v369_v47 = vld [vmem:[%s2140_s24 + $0xb0] sm:$0xff]  ;;  %v372_v49 = vld [vmem:[%s2140_s24 + $0xc8] sm:$0xff]  ;;  %v403_v50 = vld [vmem:[%s2148_s9 + $0xc0] sm:$0xff] }
  0xd9   : > { %v371_v51 = vld [vmem:[%s2140_s24 + $0xc0] sm:$0xff]  ;;  %v406_v52 = vld [vmem:[%s2148_s9 + $0xd8] sm:$0xff]  ;;  %v405_v54 = vld [vmem:[%s2148_s9 + $0xd0] sm:$0xff] }
  0xda   : > { %1423 = vmatpush1.bf16.msra.mxu1 %v1422_v56  ;;  %v374_v53 = vld [vmem:[%s2140_s24 + $0xd8] sm:$0xff]  ;;  %v373_v55 = vld [vmem:[%s2140_s24 + $0xd0] sm:$0xff]  ;;  %v408_v56 = vld [vmem:[%s2148_s9 + $0xe8] sm:$0xff] }
  0xdb   : > { %1487 = vmatpush1.bf16.msra.mxu0 %v1486_v57  ;;  %1425 = vmatprep.subr.bf16.mxu1 %v1424_v58  ;;  %v376_v57 = vld [vmem:[%s2140_s24 + $0xe8] sm:$0xff]  ;;  %v407_v58 = vld [vmem:[%s2148_s9 + $0xe0] sm:$0xff]  ;;  %v410_v60 = vld [vmem:[%s2148_s9 + $0xf8] sm:$0xff] }
  0xdc   : > { %1489 = vmatprep.subr.bf16.mxu0 %v1488_v61  ;;  %v375_v59 = vld [vmem:[%s2140_s24 + $0xe0] sm:$0xff]  ;;  %v378_v61 = vld [vmem:[%s2140_s24 + $0xf8] sm:$0xff]  ;;  %v409_v62 = vld [vmem:[%s2148_s9 + $0xf0] sm:$0xff] }
  0xdd   : > { %v377_v63 = vld [vmem:[%s2140_s24 + $0xf0] sm:$0xff] }
  0xde   : > { %1427 = vmatpush1.bf16.msra.mxu1 %v1426_v0  ;;  %v863_v0 = vlaneseq }
  0xdf   : > { %1491 = vmatpush1.bf16.msra.mxu0 %v1490_v1 }
  0xe0   : > { %v864_v1 = vshrl.u32 %v863_v0, 7 }
  0xe1   : > { %604 = vmatmul.mubr.f32.vlgmr.msra.gmra.mrb[0].mxu1 %v379_v2 }
  0xe2   : > { %765 = vmatmul.mubr.f32.vlgmr.msra.gmra.mrb[0].mxu0 %v347_v3  ;;  %609 = vmatprep.mubr.f32.mxu1 %v382_v4  ;;  %v865_v2 = vsub.s32 0, %v864_v1  ;;  %v861_v3 = vld [vmem:[%s2367_s3] sm:$0x3]  ;;  %v869_v4 = vsub.s32 1, %v864_v1 }
  0xe3   : > { %770 = vmatprep.mubr.f32.mxu0 %v350_v5 }
  0xe5   : > { %610 = vmatmul.mubr.f32.gmra.mrb[2].mxu1 %v381_v6  ;;  %v2225_v6 = vrot.slane %v861_v3, %v865_v2 }
  0xe6   : > { %771 = vmatmul.mubr.f32.gmra.mrb[2].mxu0 %v349_v7  ;;  %615 = vmatprep.mubr.f32.mxu1 %v384_v8 }
  0xe7   : > { %776 = vmatprep.mubr.f32.mxu0 %v352_v9  ;;  %v2227_v9 = vrot.slane %v861_v3, %v869_v4 }
  0xe9   : > { %616 = vmatmul.mubr.f32.gmra.mrb[4].mxu1 %v383_v10 }
  0xea   : > { %777 = vmatmul.mubr.f32.gmra.mrb[4].mxu0 %v351_v11  ;;  %621 = vmatprep.mubr.f32.mxu1 %v386_v12 }
  0xeb   : > { %782 = vmatprep.mubr.f32.mxu0 %v354_v13 }
  0xed   : > { %622 = vmatmul.mubr.f32.gmra.mrb[6].mxu1 %v385_v14 }
  0xee   : > { %783 = vmatmul.mubr.f32.gmra.mrb[6].mxu0 %v353_v15  ;;  %627 = vmatprep.mubr.f32.mxu1 %v388_v16 }
  0xef   : > { %788 = vmatprep.mubr.f32.mxu0 %v356_v17 }
  0xf1   : > { %628 = vmatmul.mubr.f32.gmra.mrb[8].mxu1 %v387_v18 }
  0xf2   : > { %789 = vmatmul.mubr.f32.gmra.mrb[8].mxu0 %v355_v19  ;;  %633 = vmatprep.mubr.f32.mxu1 %v390_v20 }
  0xf3   : > { %794 = vmatprep.mubr.f32.mxu0 %v358_v21 }
  0xf5   : > { %634 = vmatmul.mubr.f32.gmra.mrb[10].mxu1 %v389_v22 }
  0xf6   : > { %795 = vmatmul.mubr.f32.gmra.mrb[10].mxu0 %v357_v23  ;;  %639 = vmatprep.mubr.f32.mxu1 %v392_v24 }
  0xf7   : > { %800 = vmatprep.mubr.f32.mxu0 %v360_v25 }
  0xf9   : > { %640 = vmatmul.mubr.f32.gmra.mrb[12].mxu1 %v391_v26 }
  0xfa   : > { %801 = vmatmul.mubr.f32.gmra.mrb[12].mxu0 %v359_v27  ;;  %645 = vmatprep.mubr.f32.mxu1 %v394_v28 }
  0xfb   : > { %806 = vmatprep.mubr.f32.mxu0 %v362_v29 }
  0xfd   : > { %646 = vmatmul.mubr.f32.gmra.mrb[14].mxu1 %v393_v30 }
  0xfe   : > { %807 = vmatmul.mubr.f32.gmra.mrb[14].mxu0 %v361_v31  ;;  %651 = vmatprep.mubr.f32.mxu1 %v396_v32 }
  0xff   : > { %812 = vmatprep.mubr.f32.mxu0 %v364_v33 }
 0x101   : > { %652 = vmatmul.mubr.f32.gmra.mrb[16].mxu1 %v395_v34 }
 0x102   : > { %813 = vmatmul.mubr.f32.gmra.mrb[16].mxu0 %v363_v35  ;;  %657 = vmatprep.mubr.f32.mxu1 %v398_v36 }
 0x103   : > { %818 = vmatprep.mubr.f32.mxu0 %v366_v37 }
 0x105   : > { %658 = vmatmul.mubr.f32.gmra.mrb[18].mxu1 %v397_v38 }
 0x106   : > { %819 = vmatmul.mubr.f32.gmra.mrb[18].mxu0 %v365_v39  ;;  %663 = vmatprep.mubr.f32.mxu1 %v400_v40 }
 0x107   : > { %824 = vmatprep.mubr.f32.mxu0 %v368_v41 }
 0x109   : > { %664 = vmatmul.mubr.f32.gmra.mrb[20].mxu1 %v399_v42 }
 0x10a   : > { %825 = vmatmul.mubr.f32.gmra.mrb[20].mxu0 %v367_v43  ;;  %669 = vmatprep.mubr.f32.mxu1 %v402_v44 }
 0x10b   : > { %830 = vmatprep.mubr.f32.mxu0 %v370_v45 }
 0x10d   : > { %670 = vmatmul.mubr.f32.gmra.mrb[22].mxu1 %v401_v46 }
 0x10e   : > { %831 = vmatmul.mubr.f32.gmra.mrb[22].mxu0 %v369_v47  ;;  %675 = vmatprep.mubr.f32.mxu1 %v404_v48 }
 0x10f   : > { %836 = vmatprep.mubr.f32.mxu0 %v372_v49 }
 0x111   : > { %676 = vmatmul.mubr.f32.gmra.mrb[24].mxu1 %v403_v50 }
 0x112   : > { %837 = vmatmul.mubr.f32.gmra.mrb[24].mxu0 %v371_v51  ;;  %681 = vmatprep.mubr.f32.mxu1 %v406_v52 }
 0x113   : > { %842 = vmatprep.mubr.f32.mxu0 %v374_v53 }
 0x115   : > { %682 = vmatmul.mubr.f32.gmra.mrb[26].mxu1 %v405_v54 }
 0x116   : > { %843 = vmatmul.mubr.f32.gmra.mrb[26].mxu0 %v373_v55  ;;  %687 = vmatprep.mubr.f32.mxu1 %v408_v56 }
 0x117   : > { %848 = vmatprep.mubr.f32.mxu0 %v376_v57 }
 0x119   : > { %688 = vmatmul.mubr.f32.gmra.mrb[28].mxu1 %v407_v58 }
 0x11a   : > { %849 = vmatmul.mubr.f32.gmra.mrb[28].mxu0 %v375_v59  ;;  %693 = vmatprep.mubr.f32.mxu1 %v410_v60 }
 0x11b   : > { %854 = vmatprep.mubr.f32.mxu0 %v378_v61 }
 0x11d   : > { %694 = vmatmul.mubr.f32.gmra.mrb[30].mxu1 %v409_v62 }
 0x11e   : > { %855 = vmatmul.mubr.f32.gmra.mrb[30].mxu0 %v377_v63 }
 0x1b4   : > { %v605_v5 = vpop.f32.mrb[0].mxu1 }
 0x1b5   : > { %v766_v7 = vpop.f32.mrb[0].mxu0  ;;  %v607_v8 = vpop.f32.mrb[1].mxu1 }
 0x1b6   : > { %v767_v10 = vadd.f32 %v766_v7, %v605_v5  ;;  %v768_v11 = vpop.f32.mrb[1].mxu0 }
 0x1b7   : > { %v769_v12 = vadd.f32 %v768_v11, %v607_v8 }
 0x1b8   : > { %v873_v13 = vadd.f32 %v2225_v6, %v767_v10  ;;  %v611_v14 = vpop.f32.mrb[2].mxu1 }
 0x1b9   : > { %v874_v15 = vadd.f32 %v2227_v9, %v769_v12  ;;  %v772_v16 = vpop.f32.mrb[2].mxu0  ;;  %v613_v17 = vpop.f32.mrb[3].mxu1 }
 0x1ba   : > { %v1312_v18 = vmul.f32 -1.442695, %v873_v13  ;;  %v773_v19 = vadd.f32 %v772_v16, %v611_v14  ;;  %v774_v20 = vpop.f32.mrb[3].mxu0 }
 0x1bb   : > { %v1313_v21 = vmul.f32 -1.442695, %v874_v15  ;;  %v775_v22 = vadd.f32 %v774_v20, %v613_v17 }
 0x1bc   : > { %1599 = vpow2.f32 %v1312_v18  ;;  %v875_v23 = vadd.f32 %v2225_v6, %v773_v19  ;;  %v617_v24 = vpop.f32.mrb[4].mxu1 }
 0x1bd   : > { %1601 = vpow2.f32 %v1313_v21  ;;  %v876_v25 = vadd.f32 %v2227_v9, %v775_v22  ;;  %v778_v26 = vpop.f32.mrb[4].mxu0  ;;  %v619_v27 = vpop.f32.mrb[5].mxu1 }
 0x1be   : > { %v1314_v28 = vmul.f32 -1.442695, %v875_v23  ;;  %v779_v29 = vadd.f32 %v778_v26, %v617_v24  ;;  %v780_v30 = vpop.f32.mrb[5].mxu0 }
 0x1bf   : > { %v1315_v31 = vmul.f32 -1.442695, %v876_v25  ;;  %v781_v32 = vadd.f32 %v780_v30, %v619_v27 }
 0x1c0   : > { %1603 = vpow2.f32 %v1314_v28  ;;  %v877_v33 = vadd.f32 %v2225_v6, %v779_v29  ;;  %v623_v34 = vpop.f32.mrb[6].mxu1 }
 0x1c1   : > { %1605 = vpow2.f32 %v1315_v31  ;;  %v878_v35 = vadd.f32 %v2227_v9, %v781_v32  ;;  %v784_v36 = vpop.f32.mrb[6].mxu0  ;;  %v625_v37 = vpop.f32.mrb[7].mxu1 }
 0x1c2   : > { %v1316_v38 = vmul.f32 -1.442695, %v877_v33  ;;  %v785_v39 = vadd.f32 %v784_v36, %v623_v34  ;;  %v786_v40 = vpop.f32.mrb[7].mxu0 }
 0x1c3   : > { %v1317_v41 = vmul.f32 -1.442695, %v878_v35  ;;  %v787_v42 = vadd.f32 %v786_v40, %v625_v37 }
 0x1c4   : > { %1607 = vpow2.f32 %v1316_v38  ;;  %v879_v43 = vadd.f32 %v2225_v6, %v785_v39  ;;  %v629_v44 = vpop.f32.mrb[8].mxu1 }
 0x1c5   : > { %1609 = vpow2.f32 %v1317_v41  ;;  %v880_v45 = vadd.f32 %v2227_v9, %v787_v42  ;;  %v790_v46 = vpop.f32.mrb[8].mxu0  ;;  %v631_v47 = vpop.f32.mrb[9].mxu1 }
 0x1c6   : > { %v1600_v48 = vpop.eup %1599  ;;  %v1318_v49 = vmul.f32 -1.442695, %v879_v43  ;;  %v791_v50 = vadd.f32 %v790_v46, %v629_v44  ;;  %v792_v51 = vpop.f32.mrb[9].mxu0 }
 0x1c7   : > { %v1602_v52 = vpop.eup %1601  ;;  %v1001_v53 = vadd.f32 1.0, %v1600_v48  ;;  %v1319_v54 = vmul.f32 -1.442695, %v880_v45  ;;  %v793_v55 = vadd.f32 %v792_v51, %v631_v47 }
 0x1c8   : > { %v1002_v56 = vadd.f32 1.0, %v1602_v52  ;;  %1611 = vpow2.f32 %v1318_v49  ;;  %v881_v57 = vadd.f32 %v2225_v6, %v791_v50  ;;  %v635_v58 = vpop.f32.mrb[10].mxu1 }
 0x1c9   : > { %1613 = vrcp.f32 %v1001_v53  ;;  %v882_v59 = vadd.f32 %v2227_v9, %v793_v55  ;;  %v796_v60 = vpop.f32.mrb[10].mxu0  ;;  %v637_v61 = vpop.f32.mrb[11].mxu1 }
 0x1ca   : > { %v1604_v62 = vpop.eup %1603  ;;  %1615 = vrcp.f32 %v1002_v56  ;;  %v1320_v63 = vmul.f32 -1.442695, %v881_v57  ;;  %v797_v0 = vadd.f32 %v796_v60, %v635_v58  ;;  %v798_v1 = vpop.f32.mrb[11].mxu0 }
 0x1cb   : > { %v1606_v2 = vpop.eup %1605  ;;  %v1003_v3 = vadd.f32 1.0, %v1604_v62  ;;  %1617 = vpow2.f32 %v1319_v54  ;;  %v1321_v4 = vmul.f32 -1.442695, %v882_v59  ;;  %v799_v5 = vadd.f32 %v798_v1, %v637_v61 }
 0x1cc   : > { %v1004_v7 = vadd.f32 1.0, %v1606_v2  ;;  %1619 = vpow2.f32 %v1320_v63  ;;  %v883_v8 = vadd.f32 %v2225_v6, %v797_v0  ;;  %v641_v10 = vpop.f32.mrb[12].mxu1 }
 0x1cd   : > { %1621 = vrcp.f32 %v1003_v3  ;;  %v884_v11 = vadd.f32 %v2227_v9, %v799_v5  ;;  %v802_v12 = vpop.f32.mrb[12].mxu0  ;;  %v643_v13 = vpop.f32.mrb[13].mxu1 }
 0x1ce   : > { %v1608_v14 = vpop.eup %1607  ;;  %1623 = vrcp.f32 %v1004_v7  ;;  %v1322_v15 = vmul.f32 -1.442695, %v883_v8  ;;  %v803_v16 = vadd.f32 %v802_v12, %v641_v10  ;;  %v804_v17 = vpop.f32.mrb[13].mxu0 }
 0x1cf   : > { %v1610_v18 = vpop.eup %1609  ;;  %v1005_v19 = vadd.f32 1.0, %v1608_v14  ;;  %1625 = vpow2.f32 %v1321_v4  ;;  %v1323_v20 = vmul.f32 -1.442695, %v884_v11  ;;  %v805_v21 = vadd.f32 %v804_v17, %v643_v13 }
 0x1d0   : > { %v1006_v22 = vadd.f32 1.0, %v1610_v18  ;;  %1627 = vpow2.f32 %v1322_v15  ;;  %v885_v23 = vadd.f32 %v2225_v6, %v803_v16  ;;  %v647_v24 = vpop.f32.mrb[14].mxu1 }
 0x1d1   : > { %1629 = vrcp.f32 %v1005_v19  ;;  %v886_v25 = vadd.f32 %v2227_v9, %v805_v21  ;;  %v808_v26 = vpop.f32.mrb[14].mxu0  ;;  %v649_v27 = vpop.f32.mrb[15].mxu1 }
 0x1d2   : > { %v1612_v28 = vpop.eup %1611  ;;  %1631 = vrcp.f32 %v1006_v22  ;;  %v1324_v29 = vmul.f32 -1.442695, %v885_v23  ;;  %v809_v30 = vadd.f32 %v808_v26, %v647_v24  ;;  %v810_v31 = vpop.f32.mrb[15].mxu0 }
 0x1d3   : > { %v1614_v32 = vpop.eup %1613  ;;  %v1007_v33 = vadd.f32 1.0, %v1612_v28  ;;  %1633 = vpow2.f32 %v1323_v20  ;;  %v1325_v34 = vmul.f32 -1.442695, %v886_v25  ;;  %v811_v35 = vadd.f32 %v810_v31, %v649_v27 }
 0x1d4   : > { %v1616_v36 = vpop.eup %1615  ;;  %1097 = vst [vmem:[%s2244_s11] sm:$0xff] %v1614_v32  ;;  %1635 = vpow2.f32 %v1324_v29  ;;  %v887_v37 = vadd.f32 %v2225_v6, %v809_v30  ;;  %v653_v38 = vpop.f32.mrb[16].mxu1 }
 0x1d5   : > { %v1618_v39 = vpop.eup %1617  ;;  %1098 = vst [vmem:[%s2244_s11 + $0x8] sm:$0xff] %v1616_v36  ;;  %1637 = vrcp.f32 %v1007_v33  ;;  %v888_v40 = vadd.f32 %v2227_v9, %v811_v35  ;;  %v814_v41 = vpop.f32.mrb[16].mxu0 }
 0x1d6   : > { %v655_v42 = vpop.f32.mrb[17].mxu1  ;;  %v1620_v43 = vpop.eup %1619  ;;  %v1008_v44 = vadd.f32 1.0, %v1618_v39  ;;  %1639 = vpow2.f32 %v1325_v34  ;;  %v1326_v45 = vmul.f32 -1.442695, %v887_v37  ;;  %v815_v46 = vadd.f32 %v814_v41, %v653_v38 }
 0x1d7   : > { %v816_v47 = vpop.f32.mrb[17].mxu0  ;;  %v1622_v48 = vpop.eup %1621  ;;  %v1009_v49 = vadd.f32 1.0, %v1620_v43  ;;  %v1327_v50 = vmul.f32 -1.442695, %v888_v40 }
 0x1d8   : > { %v817_v51 = vadd.f32 %v816_v47, %v655_v42  ;;  %v1624_v52 = vpop.eup %1623  ;;  %1099 = vst [vmem:[%s2244_s11 + $0x10] sm:$0xff] %v1622_v48  ;;  %1641 = vrcp.f32 %v1008_v44  ;;  %v889_v53 = vadd.f32 %v2225_v6, %v815_v46  ;;  %v659_v54 = vpop.f32.mrb[18].mxu1 }
 0x1d9   : > { %v1626_v55 = vpop.eup %1625  ;;  %1100 = vst [vmem:[%s2244_s11 + $0x18] sm:$0xff] %v1624_v52  ;;  %1643 = vrcp.f32 %v1009_v49  ;;  %v820_v57 = vpop.f32.mrb[18].mxu0 }
 0x1da   : > { %v890_v56 = vadd.f32 %v2227_v9, %v817_v51  ;;  %v661_v58 = vpop.f32.mrb[19].mxu1  ;;  %v1628_v59 = vpop.eup %1627  ;;  %v1010_v60 = vadd.f32 1.0, %v1626_v55  ;;  %1645 = vpow2.f32 %v1326_v45  ;;  %v1328_v61 = vmul.f32 -1.442695, %v889_v53 }
 0x1db   : > { %v821_v62 = vadd.f32 %v820_v57, %v659_v54  ;;  %v822_v63 = vpop.f32.mrb[19].mxu0  ;;  %v1630_v0 = vpop.eup %1629  ;;  %v1011_v1 = vadd.f32 1.0, %v1628_v59  ;;  %1647 = vpow2.f32 %v1327_v50 }
 0x1dc   : > { %v1329_v2 = vmul.f32 -1.442695, %v890_v56  ;;  %v823_v3 = vadd.f32 %v822_v63, %v661_v58  ;;  %v1632_v4 = vpop.eup %1631  ;;  %1101 = vst [vmem:[%s2244_s11 + $0x20] sm:$0xff] %v1630_v0  ;;  %1649 = vrcp.f32 %v1010_v60  ;;  %v665_v7 = vpop.f32.mrb[20].mxu1 }
 0x1dd   : > { %v891_v5 = vadd.f32 %v2225_v6, %v821_v62  ;;  %v1634_v8 = vpop.eup %1633  ;;  %1102 = vst [vmem:[%s2244_s11 + $0x28] sm:$0xff] %v1632_v4  ;;  %1651 = vrcp.f32 %v1011_v1  ;;  %v826_v11 = vpop.f32.mrb[20].mxu0 }
 0x1de   : > { %v892_v10 = vadd.f32 %v2227_v9, %v823_v3  ;;  %v667_v12 = vpop.f32.mrb[21].mxu1  ;;  %v1636_v13 = vpop.eup %1635  ;;  %v1012_v14 = vadd.f32 1.0, %v1634_v8  ;;  %1653 = vpow2.f32 %v1328_v61  ;;  %v827_v16 = vadd.f32 %v826_v11, %v665_v7 }
 0x1df   : > { %v1330_v15 = vmul.f32 -1.442695, %v891_v5  ;;  %v828_v17 = vpop.f32.mrb[21].mxu0  ;;  %v1638_v18 = vpop.eup %1637  ;;  %v1013_v19 = vadd.f32 1.0, %v1636_v13  ;;  %1655 = vpow2.f32 %v1329_v2 }
 0x1e0   : > { %v829_v20 = vadd.f32 %v828_v17, %v667_v12  ;;  %v1640_v21 = vpop.eup %1639  ;;  %1103 = vst [vmem:[%s2244_s11 + $0x30] sm:$0xff] %v1638_v18  ;;  %1657 = vrcp.f32 %v1012_v14  ;;  %v1331_v22 = vmul.f32 -1.442695, %v892_v10  ;;  %v893_v23 = vadd.f32 %v2225_v6, %v827_v16  ;;  %v671_v24 = vpop.f32.mrb[22].mxu1 }
 0x1e1   : > { %1659 = vrcp.f32 %v1013_v19  ;;  %v1014_v25 = vadd.f32 1.0, %v1640_v21  ;;  %v832_v27 = vpop.f32.mrb[22].mxu0  ;;  %v673_v28 = vpop.f32.mrb[23].mxu1 }
 0x1e2   : > { %v894_v26 = vadd.f32 %v2227_v9, %v829_v20  ;;  %v1642_v29 = vpop.eup %1641  ;;  %1661 = vpow2.f32 %v1330_v15  ;;  %v1332_v30 = vmul.f32 -1.442695, %v893_v23  ;;  %v833_v31 = vadd.f32 %v832_v27, %v671_v24  ;;  %v834_v32 = vpop.f32.mrb[23].mxu0 }
 0x1e3   : > { %v1644_v33 = vpop.eup %1643  ;;  %1104 = vst [vmem:[%s2244_s11 + $0x38] sm:$0xff] %v1642_v29  ;;  %1663 = vrcp.f32 %v1014_v25  ;;  %v835_v35 = vadd.f32 %v834_v32, %v673_v28 }
 0x1e4   : > { %v1333_v34 = vmul.f32 -1.442695, %v894_v26  ;;  %v1646_v36 = vpop.eup %1645  ;;  %1105 = vst [vmem:[%s2244_s11 + $0x40] sm:$0xff] %v1644_v33  ;;  %1665 = vpow2.f32 %v1331_v22  ;;  %v895_v37 = vadd.f32 %v2225_v6, %v833_v31  ;;  %v677_v38 = vpop.f32.mrb[24].mxu1 }
 0x1e5   : > { %v1648_v39 = vpop.eup %1647  ;;  %v1015_v40 = vadd.f32 1.0, %v1646_v36  ;;  %1667 = vpow2.f32 %v1332_v30  ;;  %v896_v41 = vadd.f32 %v2227_v9, %v835_v35  ;;  %v838_v42 = vpop.f32.mrb[24].mxu0 }
 0x1e6   : > { %v679_v43 = vpop.f32.mrb[25].mxu1  ;;  %v1650_v44 = vpop.eup %1649  ;;  %v1016_v45 = vadd.f32 1.0, %v1648_v39  ;;  %1669 = vpow2.f32 %v1333_v34  ;;  %v1334_v46 = vmul.f32 -1.442695, %v895_v37  ;;  %v839_v47 = vadd.f32 %v838_v42, %v677_v38 }
 0x1e7   : > { %v840_v48 = vpop.f32.mrb[25].mxu0  ;;  %v1652_v49 = vpop.eup %1651  ;;  %1106 = vst [vmem:[%s2244_s11 + $0x48] sm:$0xff] %v1650_v44  ;;  %1671 = vrcp.f32 %v1015_v40  ;;  %v1335_v50 = vmul.f32 -1.442695, %v896_v41 }
 0x1e8   : > { %v841_v51 = vadd.f32 %v840_v48, %v679_v43  ;;  %v1654_v52 = vpop.eup %1653  ;;  %1107 = vst [vmem:[%s2244_s11 + $0x50] sm:$0xff] %v1652_v49  ;;  %1673 = vrcp.f32 %v1016_v45  ;;  %v897_v53 = vadd.f32 %v2225_v6, %v839_v47  ;;  %v683_v54 = vpop.f32.mrb[26].mxu1 }
 0x1e9   : > { %v1656_v55 = vpop.eup %1655  ;;  %v1017_v56 = vadd.f32 1.0, %v1654_v52  ;;  %1675 = vpow2.f32 %v1334_v46  ;;  %v844_v58 = vpop.f32.mrb[26].mxu0 }
 0x1ea   : > { %v898_v57 = vadd.f32 %v2227_v9, %v841_v51  ;;  %v685_v59 = vpop.f32.mrb[27].mxu1  ;;  %v1658_v60 = vpop.eup %1657  ;;  %v1018_v61 = vadd.f32 1.0, %v1656_v55  ;;  %1677 = vpow2.f32 %v1335_v50  ;;  %v1336_v62 = vmul.f32 -1.442695, %v897_v53 }
 0x1eb   : > { %v845_v63 = vadd.f32 %v844_v58, %v683_v54  ;;  %v846_v0 = vpop.f32.mrb[27].mxu0  ;;  %v1660_v1 = vpop.eup %1659  ;;  %1108 = vst [vmem:[%s2244_s11 + $0x58] sm:$0xff] %v1658_v60  ;;  %1679 = vrcp.f32 %v1017_v56 }
 0x1ec   : > { %v1337_v2 = vmul.f32 -1.442695, %v898_v57  ;;  %v847_v3 = vadd.f32 %v846_v0, %v685_v59  ;;  %v1662_v4 = vpop.eup %1661  ;;  %1109 = vst [vmem:[%s2244_s11 + $0x60] sm:$0xff] %v1660_v1  ;;  %1681 = vrcp.f32 %v1018_v61  ;;  %v689_v7 = vpop.f32.mrb[28].mxu1 }
 0x1ed   : > { %v899_v5 = vadd.f32 %v2225_v6, %v845_v63  ;;  %v1664_v8 = vpop.eup %1663  ;;  %v1019_v10 = vadd.f32 1.0, %v1662_v4  ;;  %1683 = vpow2.f32 %v1336_v62  ;;  %v850_v12 = vpop.f32.mrb[28].mxu0 }
 0x1ee   : > { %v900_v11 = vadd.f32 %v2227_v9, %v847_v3  ;;  %v691_v13 = vpop.f32.mrb[29].mxu1  ;;  %v1666_v14 = vpop.eup %1665  ;;  %1110 = vst [vmem:[%s2244_s11 + $0x68] sm:$0xff] %v1664_v8  ;;  %1685 = vpow2.f32 %v1337_v2  ;;  %v851_v16 = vadd.f32 %v850_v12, %v689_v7 }
 0x1ef   : > { %v1338_v15 = vmul.f32 -1.442695, %v899_v5  ;;  %v852_v17 = vpop.f32.mrb[29].mxu0  ;;  %v1668_v18 = vpop.eup %1667  ;;  %1687 = vrcp.f32 %v1019_v10  ;;  %v1020_v19 = vadd.f32 1.0, %v1666_v14 }
 0x1f0   : > { %v853_v20 = vadd.f32 %v852_v17, %v691_v13  ;;  %v1670_v21 = vpop.eup %1669  ;;  %v1021_v22 = vadd.f32 1.0, %v1668_v18  ;;  %v1339_v23 = vmul.f32 -1.442695, %v900_v11  ;;  %v901_v24 = vadd.f32 %v2225_v6, %v851_v16  ;;  %v695_v25 = vpop.f32.mrb[30].mxu1 }
 0x1f1   : > { %1689 = vpow2.f32 %v1338_v15  ;;  %v1672_v26 = vpop.eup %1671  ;;  %v1022_v27 = vadd.f32 1.0, %v1670_v21  ;;  %v856_v29 = vpop.f32.mrb[30].mxu0 }
 0x1f2   : > { %1691 = vrcp.f32 %v1020_v19  ;;  %v902_v28 = vadd.f32 %v2227_v9, %v853_v20  ;;  %v697_v30 = vpop.f32.mrb[31].mxu1  ;;  %v1674_v31 = vpop.eup %1673  ;;  %1111 = vst [vmem:[%s2244_s11 + $0x70] sm:$0xff] %v1672_v26  ;;  %v1340_v32 = vmul.f32 -1.442695, %v901_v24  ;;  %v857_v33 = vadd.f32 %v856_v29, %v695_v25 }
 0x1f3   : > { %1693 = vrcp.f32 %v1021_v22  ;;  %v858_v34 = vpop.f32.mrb[31].mxu0  ;;  %v1676_v35 = vpop.eup %1675  ;;  %1112 = vst [vmem:[%s2244_s11 + $0x78] sm:$0xff] %v1674_v31 }
 0x1f4   : > { %1695 = vrcp.f32 %v1022_v27  ;;  %v859_v36 = vadd.f32 %v858_v34, %v697_v30  ;;  %v1678_v37 = vpop.eup %1677  ;;  %v1023_v38 = vadd.f32 1.0, %v1676_v35  ;;  %v1341_v39 = vmul.f32 -1.442695, %v902_v28 }
 0x1f5   : > { %1697 = vpow2.f32 %v1339_v23  ;;  %v903_v40 = vadd.f32 %v2225_v6, %v857_v33  ;;  %v1680_v41 = vpop.eup %1679  ;;  %v1024_v42 = vadd.f32 1.0, %v1678_v37 }
 0x1f6   : > { %1699 = vpow2.f32 %v1340_v32  ;;  %v904_v43 = vadd.f32 %v2227_v9, %v859_v36  ;;  %v1682_v44 = vpop.eup %1681  ;;  %1113 = vst [vmem:[%s2244_s11 + $0x80] sm:$0xff] %v1680_v41 }
 0x1f7   : > { %1701 = vrcp.f32 %v1023_v38  ;;  %v1342_v45 = vmul.f32 -1.442695, %v903_v40  ;;  %v1684_v46 = vpop.eup %1683  ;;  %1114 = vst [vmem:[%s2244_s11 + $0x88] sm:$0xff] %v1682_v44 }
 0x1f8   : > { %1703 = vrcp.f32 %v1024_v42  ;;  %v1686_v47 = vpop.eup %1685  ;;  %v1025_v48 = vadd.f32 1.0, %v1684_v46  ;;  %v1343_v49 = vmul.f32 -1.442695, %v904_v43 }
 0x1f9   : > { %1705 = vpow2.f32 %v1341_v39  ;;  %v1688_v6 = vpop.eup %1687  ;;  %v1026_v50 = vadd.f32 1.0, %v1686_v47 }
 0x1fa   : > { %1707 = vpow2.f32 %v1342_v45  ;;  %1115 = vst [vmem:[%s2244_s11 + $0x90] sm:$0xff] %v1688_v6 }
 0x1fb   : > { %v1690_v51 = vpop.eup %1689  ;;  %1709 = vrcp.f32 %v1025_v48 }
 0x1fc   : > { %v1692_v9 = vpop.eup %1691  ;;  %1711 = vrcp.f32 %v1026_v50  ;;  %v1027_v52 = vadd.f32 1.0, %v1690_v51 }
 0x1fd   : > { %v1694_v53 = vpop.eup %1693  ;;  %1116 = vst [vmem:[%s2244_s11 + $0x98] sm:$0xff] %v1692_v9  ;;  %1713 = vpow2.f32 %v1343_v49 }
 0x1fe   : > { %v1696_v54 = vpop.eup %1695  ;;  %1117 = vst [vmem:[%s2244_s11 + $0xa0] sm:$0xff] %v1694_v53  ;;  %1715 = vrcp.f32 %v1027_v52 }
 0x1ff   : > { %v1698_v55 = vpop.eup %1697  ;;  %1118 = vst [vmem:[%s2244_s11 + $0xa8] sm:$0xff] %v1696_v54 }
 0x200   : > { %v1700_v56 = vpop.eup %1699  ;;  %v1028_v57 = vadd.f32 1.0, %v1698_v55 }
 0x201   : > { %v1702_v58 = vpop.eup %1701  ;;  %v1029_v59 = vadd.f32 1.0, %v1700_v56 }
 0x202   : > { %v1704_v60 = vpop.eup %1703  ;;  %1119 = vst [vmem:[%s2244_s11 + $0xb0] sm:$0xff] %v1702_v58  ;;  %1717 = vrcp.f32 %v1028_v57 }
 0x203   : > { %v1706_v61 = vpop.eup %1705  ;;  %1120 = vst [vmem:[%s2244_s11 + $0xb8] sm:$0xff] %v1704_v60  ;;  %1719 = vrcp.f32 %v1029_v59 }
 0x204   : > { %v1708_v62 = vpop.eup %1707  ;;  %v1030_v63 = vadd.f32 1.0, %v1706_v61 }
 0x205   : > { %v1710_v0 = vpop.eup %1709  ;;  %v1031_v1 = vadd.f32 1.0, %v1708_v62 }
 0x206   : > { %v1712_v2 = vpop.eup %1711  ;;  %1121 = vst [vmem:[%s2244_s11 + $0xc0] sm:$0xff] %v1710_v0  ;;  %1721 = vrcp.f32 %v1030_v63 }
 0x207   : > { %v1714_v3 = vpop.eup %1713  ;;  %1122 = vst [vmem:[%s2244_s11 + $0xc8] sm:$0xff] %v1712_v2  ;;  %1723 = vrcp.f32 %v1031_v1 }
 0x208   : > { %v1716_v4 = vpop.eup %1715  ;;  %v1032_v5 = vadd.f32 1.0, %v1714_v3 }
 0x209   : > { %1123 = vst [vmem:[%s2244_s11 + $0xd0] sm:$0xff] %v1716_v4 }
 0x20a   : > { %1725 = vrcp.f32 %v1032_v5 }
 0x20c   : > { %v1718_v7 = vpop.eup %1717 }
 0x20d   : > { %v1720_v8 = vpop.eup %1719  ;;  %1124 = vst [vmem:[%s2244_s11 + $0xd8] sm:$0xff] %v1718_v7 }
 0x20e   : > { %1125 = vst [vmem:[%s2244_s11 + $0xe0] sm:$0xff] %v1720_v8 }
 0x20f   : > { %1136 = sbr.rel (!%p2388_p11) target bundleno = 562 (0x232), region = 52 }
 0x210   : > { %v1722_v10 = vpop.eup %1721 }
 0x211   : > { %v1724_v11 = vpop.eup %1723  ;;  %1126 = vst [vmem:[%s2244_s11 + $0xe8] sm:$0xff] %v1722_v10 }
 0x212   : > { %1127 = vst [vmem:[%s2244_s11 + $0xf0] sm:$0xff] %v1724_v11 }
 0x214   : > { %v1726_v12 = vpop.eup %1725 }
 0x215   : > { %1128 = vst [vmem:[%s2244_s11 + $0xf8] sm:$0xff] %v1726_v12 }
 0x216   : > { %s2402_s2 = smov (!%p1140_p2, %s1139_s2), 16 }
 0x217   : > { %s2300_s8 = sshll.u32 %s2402_s2, 8 }
 0x218   : > { %s1145_s25 = ssub.s32 4096, %s2300_s8 }
 0x219   : > { %1146 = vsyncadd %s1130_s12, %s1145_s25  ;;  %p1348_p6 = scmp.ne.s32.totalorder %s2300_s8, 0  ;;  %s1363_s28 = sshll.u32 %s1893_s18, 12 }
 0x21a   : > { %s2310_s13 = scalar_lea.hbm %s2368_s4, %s1363_s28  ;;  %s1153_s7 = sshll.u32 %s2244_s11, 4  ;;  %s2313_s7 = int_to_ptr.vmem [resolvable:$true] %s1153_s7 }
 0x21b   : > { %s1811_s6 = scalar_lea.vmem %s2313_s7, %s2300_s8  ;;  %s1912_s24 = smov [#allocation8]  }
 0x21c   : > { %p1812_p0 = scmp.ne.s32.totalorder %s2313_s7, %s1811_s6  ;;  %s1815_s0 = sshll.u32 %s1912_s24, 4  ;;  %s1816_s0 = int_to_ptr.vmem [resolvable:$false] %s1815_s0 }
 0x21d   : > { %s1817_s18 = scalar_lea.vmem %s1816_s0, 8192  ;;  %p1818_p12 = scmp.lt.s32.totalorder %s2313_s7, %s1816_s0 }
 0x21e   : > { %p1813_p7 = pnand %p1812_p0, %p1348_p6  ;;  %p1819_p1 = scmp.lt.s32.totalorder %s1817_s18, %s1811_s6 }
 0x220   : > { %p1814_p10 = pneg %p1813_p7  ;;  %p1820_p5 = por %p1819_p1, %p1818_p12 }
 0x222   : > { %p1821_p13 = pnand %p1820_p5, %p1814_p10 }
 0x224   : > { %1824 = shalt.err (!%p1821_p13)
}
 0x225   : > { %s1825_s5 = scalar_lea.hbm %s2310_s13, %s2300_s8  ;;  %s1829_s27 = scalar_lea.hbm %s2368_s4, 6400 }
 0x226   : > { %p1826_p4 = scmp.ne.s32.totalorder %s2310_s13, %s1825_s5  ;;  %p1830_p11 = scmp.lt.u32.totalorder %s2310_s13, %s2368_s4 }
 0x227   : > { %p1831_p2 = scmp.lt.u32.totalorder %s1829_s27, %s1825_s5  ;;  %p1833_p7 = scmp.lt.u32.totalorder %s1825_s5, %s2310_s13 }
 0x228   : > { %p1827_p8 = pnand %p1826_p4, %p1348_p6 }
 0x229   : > { %p1832_p0 = por %p1831_p2, %p1830_p11 }
 0x22a   : > { %p1828_p9 = pneg %p1827_p8 }
 0x22b   : > { %p1834_p10 = por %p1833_p7, %p1832_p0 }
 0x22d   : > { %p1835_p12 = pnand %p1834_p10, %p1828_p9 }
 0x22f   : > { %1838 = shalt.err (!%p1835_p12)
}
 0x230   : > { %s1913_s2 = smov 256   ;;  %s1914_s25 = smov 16  }
 0x231   : > { %1159 = dma.vmem_to_hbm [thread:$0]  (%p1348_p6), %s2313_s7, %s2300_s8, %s2310_s13, %s1130_s12, %s1913_s2, %s1913_s2, %s1914_s25  }
 0x232 PF: > { %s1168_s28 = sand.u32 1, %s1881_s15   ;;  %p2389_p1 = scmp.ne.s32.totalorder %s2377_s30, 0 }
 0x233   : > { %s1169_s22 = scalar_lea.sflag [#allocation4], %s1168_s28 }
 0x234   : > { %p1536_p5 = pnand %p1288_p3, %p2389_p1 }
 0x236   : > { %1876 = dma.done.wait (!%p1536_p5), %s1169_s22, 4096  }
 0x237   : > { %1878 = vsyncadd (!%p1536_p5), %s1169_s22, 4294963200  ;;  %s23_s20 = sadd.s32 1, %s1901_s20   ;;  %s2390_s15 = smov %s1885_s16 }
 0x238   : > { %p20_p13 = scmp.ge.s32.totalorder %s23_s20, 4   ;;  %s2391_s16 = smov %s1889_s17 }
 0x239   : > { %s2392_s17 = smov %s2002_s29  ;;  %s2393_s18 = smov %s1897_s19 }
 0x23a   : > { %s2394_s19 = smov %s2396_s23  ;;  %22 = sbr.rel (!%p20_p13) target bundleno = 11 (0xb), region = 102 }
 0x241   :  { %1174 = vsyncpa [#allocation3], 1 }
 0x242   :  { %1176 = vsyncpa [#allocation3 + $0x1], 1 }
 0x243   :  { %1177 = vsyncpa [#allocation6], 1 }
 0x244   :  { %1179 = vsyncpa [#allocation6 + $0x1], 1 }
 0x245   :  { %1180 = vsyncpa [#allocation4], 1 }
 0x246   :  { %1182 = vsyncpa [#allocation4 + $0x1], 1 }

</bundles_post_ra>
